<compile_context>
chip_gen: v6e
topology: v6e:2x2x1
jax: 0.10.0
libtpu: 0.0.40
codegen_flags: <defaults>
</compile_context>

<pallas_src>
import functools

import jax
import jax.numpy as jnp
from jax import lax
from jax.experimental import pallas as pl
from jax.experimental.pallas import tpu as pltpu

_LANE = 128
_MIB = 1024 * 1024


def _round_up(x, m):
    return (x + m - 1) // m * m


def _vmem_capacity_bytes():
    try:
        info = pltpu.get_tpu_info()
        cap = getattr(info, "vmem_capacity_bytes", None)
        if cap:
            return int(cap)
    except Exception:
        pass
    return 64 * _MIB  # conservative (v7x-sized) fallback


def _pick_node_tile(n_pad, cap_bytes):
    # v7x (64 MiB VMEM): cap row/col tiles at 256; v5e/v6e (128 MiB): allow 512.
    max_t = 512 if cap_bytes > 64 * _MIB else 256
    for t in (512, 256, 128):
        if t <= max_t and n_pad % t == 0:
            return t
    return n_pad


def _compiler_params(est_vmem_bytes, cap_bytes, semantics):
    ceiling = 100 * _MIB if cap_bytes > 64 * _MIB else 48 * _MIB
    limit = int(min(ceiling, max(16 * _MIB, 2 * est_vmem_bytes)))
    return pltpu.CompilerParams(dimension_semantics=semantics,
                                vmem_limit_bytes=limit)


# --------------------------------------------------------------------------
# Kernels
# --------------------------------------------------------------------------

def _gcn_layer_kernel(a_t_ref, zy_ref, zself_ref, dinv_ref, w_ref, b_ref,
                      out_ref, zout_ref, acc_ref):
    """One GCNConv over a row tile, K-tiled over the node (contraction) axis.

    zy = dinv * Y (bf16).  acc accumulates A^T_tile @ zy over k; at the last k:
      agg = dinv * (acc + zy_self)        (== prop(Y) rows)
      out = agg @ W + b                    (== prop(Y @ W) + b, prop is linear)
      zout = (dinv * out).astype(bf16)     (pre-scaled operand for the next layer)
    """
    k = pl.program_id(1)

    @pl.when(k == 0)
    def _():
        acc_ref[...] = jnp.zeros_like(acc_ref)

    acc_ref[...] += jnp.dot(a_t_ref[...], zy_ref[...],
                            preferred_element_type=jnp.float32)

    @pl.when(k == pl.num_programs(1) - 1)
    def _():
        agg = dinv_ref[...] * (acc_ref[...] + zself_ref[...].astype(jnp.float32))
        out = jnp.dot(agg.astype(jnp.bfloat16), w_ref[...],
                      preferred_element_type=jnp.float32) + b_ref[...]
        out_ref[...] = out
        zout_ref[...] = (dinv_ref[...] * out).astype(jnp.bfloat16)


def _gcn_fused_decoder_kernel(a_t_ref, zy_ref, zself_ref, dinv_ref,
                              w_ds_ref, b_ds_ref, z2_ref, h2_ref, acc_ref):
    """Attr-decoder conv1 (+ReLU, prescaled) and struct-decoder conv fused:
    the expensive N x N aggregation of `emb` is computed once, and the two
    feature transforms run as ONE 256-lane-wide matmul ([W_d1 | W_s])."""
    k = pl.program_id(1)

    @pl.when(k == 0)
    def _():
        acc_ref[...] = jnp.zeros_like(acc_ref)

    acc_ref[...] += jnp.dot(a_t_ref[...], zy_ref[...],
                            preferred_element_type=jnp.float32)

    @pl.when(k == pl.num_programs(1) - 1)
    def _():
        hid = h2_ref.shape[1]
        agg = dinv_ref[...] * (acc_ref[...] + zself_ref[...].astype(jnp.float32))
        h12 = jnp.dot(agg.astype(jnp.bfloat16), w_ds_ref[...],
                      preferred_element_type=jnp.float32) + b_ds_ref[...]
        h1 = jnp.maximum(h12[:, :hid], 0.0)
        z2_ref[...] = (dinv_ref[...] * h1).astype(jnp.bfloat16)   # dinv*relu(conv1)
        h2_ref[...] = h12[:, hid:].astype(jnp.bfloat16)           # struct-dec conv


def _dot_decoder_kernel(h2i_ref, h2j_ref, s_ref):
    """s[i-block, j-block] = h2_i @ h2_j^T — contraction on the feature axis,
    so h2^T is never materialized (no sigmoid)."""
    s_ref[...] = lax.dot_general(
        h2i_ref[...], h2j_ref[...],
        dimension_numbers=(((1,), (1,)), ((), ())),
        preferred_element_type=jnp.float32)


# --------------------------------------------------------------------------
# pallas_call wrappers
# --------------------------------------------------------------------------

def _gcn_layer_call(a_t, zy, dinv, w, b, *, tm, tk, cap):
    n = a_t.shape[0]
    f_in = zy.shape[1]
    f_out = w.shape[1]
    n_row = n // tm
    flops = 2 * n * n * f_in + 2 * n * f_in * f_out
    bytes_acc = (n * n * 2 + n_row * n * f_in * 2 + n * f_in * 2
                 + f_in * f_out * 2 + n * f_out * (4 + 2) + n * 4)
    vmem = (2 * tm * tk * 2            # A^T tile (bf16, double-buffered)
            + 2 * tk * f_in * 2        # zy k-block
            + 2 * tm * f_in * 2        # zy self row-block
            + 2 * tm * _LANE * 4       # dinv (lane-padded)
            + 2 * f_in * f_out * 2     # W (resident, counted x2)
            + 2 * 8 * f_out * 4        # bias
            + 2 * tm * f_out * 4       # out (f32)
            + 2 * tm * f_out * 2       # zout (bf16)
            + tm * f_in * 4)           # accumulator scratch
    return pl.pallas_call(
        _gcn_layer_kernel,
        out_shape=(jax.ShapeDtypeStruct((n, f_out), jnp.float32),
                   jax.ShapeDtypeStruct((n, f_out), jnp.bfloat16)),
        grid=(n_row, n // tk),
        in_specs=[
            pl.BlockSpec((tm, tk), lambda i, k: (i, k)),      # A^T tile (bf16)
            pl.BlockSpec((tk, f_in), lambda i, k: (k, 0)),    # dinv*Y, k-streamed
            pl.BlockSpec((tm, f_in), lambda i, k: (i, 0)),    # dinv*Y self rows
            pl.BlockSpec((tm, 1), lambda i, k: (i, 0)),       # dinv rows (f32)
            pl.BlockSpec((f_in, f_out), lambda i, k: (0, 0)),  # W (bf16, resident)
            pl.BlockSpec((1, f_out), lambda i, k: (0, 0)),     # bias (f32)
        ],
        out_specs=(pl.BlockSpec((tm, f_out), lambda i, k: (i, 0)),
                   pl.BlockSpec((tm, f_out), lambda i, k: (i, 0))),
        scratch_shapes=[pltpu.VMEM((tm, f_in), jnp.float32)],
        compiler_params=_compiler_params(vmem, cap, ("parallel", "arbitrary")),
        cost_estimate=pl.CostEstimate(flops=flops, transcendentals=0,
                                      bytes_accessed=bytes_acc),
    )(a_t, zy, zy, dinv, w, b)


def _gcn_fused_decoder_call(a_t, zy, dinv, w_ds, b_ds, *, tm, tk, cap):
    n = a_t.shape[0]
    f_in = zy.shape[1]
    f2 = w_ds.shape[1]          # 2 * hid_p
    hid = f2 // 2
    n_row = n // tm
    flops = 2 * n * n * f_in + 2 * n * f_in * f2
    bytes_acc = (n * n * 2 + n_row * n * f_in * 2 + n * f_in * 2
                 + f_in * f2 * 2 + 2 * n * hid * 2 + n * 4)
    vmem = (2 * tm * tk * 2 + 2 * tk * f_in * 2 + 2 * tm * f_in * 2
            + 2 * tm * _LANE * 4 + 2 * f_in * f2 * 2 + 2 * 8 * f2 * 4
            + 4 * tm * hid * 2 + tm * f_in * 4)
    return pl.pallas_call(
        _gcn_fused_decoder_kernel,
        out_shape=(jax.ShapeDtypeStruct((n, hid), jnp.bfloat16),   # z2 = dinv*relu(h1)
                   jax.ShapeDtypeStruct((n, hid), jnp.bfloat16)),  # h2
        grid=(n_row, n // tk),
        in_specs=[
            pl.BlockSpec((tm, tk), lambda i, k: (i, k)),
            pl.BlockSpec((tk, f_in), lambda i, k: (k, 0)),
            pl.BlockSpec((tm, f_in), lambda i, k: (i, 0)),
            pl.BlockSpec((tm, 1), lambda i, k: (i, 0)),
            pl.BlockSpec((f_in, f2), lambda i, k: (0, 0)),    # [W_d1 | W_s] (bf16)
            pl.BlockSpec((1, f2), lambda i, k: (0, 0)),       # [b_d1 | b_s] (f32)
        ],
        out_specs=(pl.BlockSpec((tm, hid), lambda i, k: (i, 0)),
                   pl.BlockSpec((tm, hid), lambda i, k: (i, 0))),
        scratch_shapes=[pltpu.VMEM((tm, f_in), jnp.float32)],
        compiler_params=_compiler_params(vmem, cap, ("parallel", "arbitrary")),
        cost_estimate=pl.CostEstimate(flops=flops, transcendentals=0,
                                      bytes_accessed=bytes_acc),
    )(a_t, zy, zy, dinv, w_ds, b_ds)


def _dot_decoder_call(h2, *, tm, tn, cap):
    n, f = h2.shape
    n_row = n // tm
    flops = 2 * n * n * f
    bytes_acc = n * f * 2 + n_row * n * f * 2 + n * n * 4
    vmem = 2 * tm * f * 2 + 2 * tn * f * 2 + 2 * tm * tn * 4
    return pl.pallas_call(
        _dot_decoder_kernel,
        out_shape=jax.ShapeDtypeStruct((n, n), jnp.float32),
        grid=(n_row, n // tn),
        in_specs=[pl.BlockSpec((tm, f), lambda i, j: (i, 0)),   # h2 row tile (bf16)
                  pl.BlockSpec((tn, f), lambda i, j: (j, 0))],  # h2 col tile (bf16)
        out_specs=pl.BlockSpec((tm, tn), lambda i, j: (i, j)),
        compiler_params=_compiler_params(vmem, cap, ("parallel", "parallel")),
        cost_estimate=pl.CostEstimate(flops=flops, transcendentals=0,
                                      bytes_accessed=bytes_acc),
    )(h2, h2)


# --------------------------------------------------------------------------
# Forward pass
# --------------------------------------------------------------------------

@functools.partial(jax.jit, static_argnames=("num_nodes",))
def dominant_forward(x, edge_index, params, *, num_nodes):
    """x: [N, in_dim] f32, edge_index: [2, E] int32 -> (x_ [N,in_dim], s_ [N,N])."""
    n = num_nodes
    in_dim = x.shape[1]
    hid = params["w_enc"].shape[1]

    in_p = _round_up(in_dim, _LANE)
    hid_p = _round_up(hid, _LANE)
    n_pad = 128 if n <= 128 else _round_up(n, 256)   # always lane-dense

    cap = _vmem_capacity_bytes()
    tm = _pick_node_tile(n_pad, cap)
    tk = tm

    # ---- O(E) / O(N*F) glue ----
    # A^T built directly (to_dense_adj scatter-add of ones), bf16 (exact for counts).
    a_t = jnp.zeros((n_pad, n_pad), jnp.float32)
    a_t = a_t.at[edge_index[1], edge_index[0]].add(1.0).astype(jnp.bfloat16)
    # dinv = (in_degree + 1)^{-1/2}, O(E) — no N x N reduction in the kernel.
    deg = jnp.zeros((n_pad,), jnp.float32).at[edge_index[1]].add(1.0) + 1.0
    dinv = lax.rsqrt(deg)[:, None]                                    # [N, 1] f32

    bf16 = jnp.bfloat16
    x_pad = jnp.pad(x.astype(jnp.float32), ((0, n_pad - n), (0, in_p - in_dim)))
    w_enc = jnp.pad(params["w_enc"], ((0, in_p - in_dim), (0, hid_p - hid))).astype(bf16)
    b_enc = jnp.pad(params["b_enc"], ((0, 0), (0, hid_p - hid)))
    w_d2 = jnp.pad(params["w_d2"], ((0, hid_p - hid), (0, in_p - in_dim))).astype(bf16)
    b_d2 = jnp.pad(params["b_d2"], ((0, 0), (0, in_p - in_dim)))
    w_d1 = jnp.pad(params["w_d1"], ((0, hid_p - hid), (0, hid_p - hid)))
    b_d1 = jnp.pad(params["b_d1"], ((0, 0), (0, hid_p - hid)))
    w_s = jnp.pad(params["w_s"], ((0, hid_p - hid), (0, hid_p - hid)))
    b_s = jnp.pad(params["b_s"], ((0, 0), (0, hid_p - hid)))
    # single 256-lane-wide fused decoder matmul: [W_d1 | W_s], [b_d1 | b_s]
    w_ds = jnp.concatenate([w_d1, w_s], axis=1).astype(bf16)
    b_ds = jnp.concatenate([b_d1, b_s], axis=1)

    # ---- shared encoder: 1 GCNConv (z1 = dinv*emb emitted by the kernel) ----
    z0 = (dinv * x_pad).astype(bf16)
    _, z1 = _gcn_layer_call(a_t, z0, dinv, w_enc, b_enc, tm=tm, tk=tk, cap=cap)

    # ---- attr-decoder conv1 (+ReLU) and struct-decoder conv: shared aggregation
    #      and one 256-wide transform; outputs already prescaled / bf16 ----
    z2, h2 = _gcn_fused_decoder_call(a_t, z1, dinv, w_ds, b_ds, tm=tm, tk=tk, cap=cap)

    # ---- attr-decoder conv2 ----
    x_rec, _ = _gcn_layer_call(a_t, z2, dinv, w_d2, b_d2, tm=tm, tk=tk, cap=cap)
    x_rec = x_rec[:n, :in_dim]

    # ---- structure decoder: s = h2 @ h2^T (2-D tiled, no transpose, no sigmoid) ----
    s_rec = _dot_decoder_call(h2, tm=tm, tn=tm, cap=cap)[:n, :n]

    return x_rec, s_rec


# --------------------------------------------------------------------------
# Params / reference / test
# --------------------------------------------------------------------------

def _glorot(key, fan_in, fan_out):
    s = (6.0 / (fan_in + fan_out)) ** 0.5
    return jax.random.uniform(key, (fan_in, fan_out), jnp.float32, -s, s)


def init_params(key, in_dim, hid_dim):
    ks = jax.random.split(key, 4)
    return {
        "w_enc": _glorot(ks[0], in_dim, hid_dim),
        "b_enc": jnp.zeros((1, hid_dim), jnp.float32),
        "w_d1": _glorot(ks[1], hid_dim, hid_dim),
        "b_d1": jnp.zeros((1, hid_dim), jnp.float32),
        "w_d2": _glorot(ks[2], hid_dim, in_dim),
        "b_d2": jnp.zeros((1, in_dim), jnp.float32),
        "w_s": _glorot(ks[3], hid_dim, hid_dim),
        "b_s": jnp.zeros((1, hid_dim), jnp.float32),
    }


def _reference_forward(x, edge_index, params, n):
    # pure-JAX f32 reference for a sanity check
    adj = jnp.zeros((n, n), jnp.float32).at[edge_index[0], edge_index[1]].add(1.0)
    a_tilde = adj + jnp.eye(n, dtype=jnp.float32)
    deg = jnp.sum(a_tilde, axis=0)
    dinv = 1.0 / jnp.sqrt(deg)
    p = (dinv[:, None] * a_tilde * dinv[None, :]).T     # D^{-1/2} A~^T D^{-1/2}

    def conv(y, w, b):
        return p @ (y @ w) + b

    emb = conv(x, params["w_enc"], params["b_enc"])
    h1 = jax.nn.relu(conv(emb, params["w_d1"], params["b_d1"]))
    x_rec = conv(h1, params["w_d2"], params["b_d2"])
    h2 = conv(emb, params["w_s"], params["b_s"])
    return x_rec, h2 @ h2.T


if __name__ == "__main__":
    N, IN_DIM, HID_DIM = 16, 8, 32

    key = jax.random.PRNGKey(0)
    k_x, k_p = jax.random.split(key)

    # deterministic small graph: bidirectional ring over N nodes
    src = jnp.arange(N, dtype=jnp.int32)
    edge_index = jnp.concatenate(
        [jnp.stack([src, (src + 1) % N]),
         jnp.stack([src, (src - 1) % N])], axis=1)       # [2, 2N]

    x = jax.random.normal(k_x, (N, IN_DIM), jnp.float32)
    params = init_params(k_p, IN_DIM, HID_DIM)

    x_rec, s_rec = dominant_forward(x, edge_index, params, num_nodes=N)
    jax.block_until_ready((x_rec, s_rec))

    # sanity check against f32 reference (kernels deliberately use bf16 MXU
    # operands throughout, hence the relaxed tolerance)
    x_ref, s_ref = _reference_forward(x, edge_index, params, N)
    assert x_rec.shape == (N, IN_DIM) and s_rec.shape == (N, N)
    assert jnp.allclose(x_rec, x_ref, atol=5e-2, rtol=5e-2)
    assert jnp.allclose(s_rec, s_ref, atol=5e-2, rtol=5e-2)

    print("KERNEL_OK")
</pallas_src>

<mosaic_0001>
module attributes {stable_mosaic.version = 11 : i64} {
  func.func private @main(%arg0: i32) attributes {dimension_semantics = [#tpu.dimension_semantics<core_parallel>], iteration_bounds = array<i64: 2>, tpu.core_type = #tpu.core_type<sc_scalar_subcore>, window_params = []} {
    return
  }
}

module attributes {stable_mosaic.version = 11 : i64} {
  func.func private @main(%arg0: i32) attributes {dimension_semantics = [#tpu.dimension_semantics<core_parallel>], iteration_bounds = array<i64: 2>, tpu.core_type = #tpu.core_type<sc_scalar_subcore>, window_params = []} {
    return
  }
}

module attributes {stable_mosaic.version = 11 : i64} {
  func.func @_gcn_fused_decoder_kernel(%arg0: i32, %arg1: i32, %arg2: memref<128x128xbf16, #tpu.memory_space<vmem>>, %arg3: memref<128x128xbf16, #tpu.memory_space<vmem>>, %arg4: memref<128x128xbf16, #tpu.memory_space<vmem>>, %arg5: memref<128x1xf32, #tpu.memory_space<vmem>>, %arg6: memref<128x256xbf16, #tpu.memory_space<vmem>>, %arg7: memref<1x256xf32, #tpu.memory_space<vmem>>, %arg8: memref<128x128xbf16, #tpu.memory_space<vmem>>, %arg9: memref<128x128xbf16, #tpu.memory_space<vmem>>, %arg10: memref<128x128xf32, #tpu.memory_space<vmem>>) attributes {dimension_semantics = [#tpu.dimension_semantics<parallel>, #tpu.dimension_semantics<arbitrary>], iteration_bounds = array<i64: 1, 1>, scalar_prefetch = 0 : i64, scratch_operands = 1 : i64, tpu.core_type = #tpu.core_type<tc>, window_params = [{transform_indices = @transform_0, window_bounds = array<i64: 128, 128>}, {transform_indices = @transform_1, window_bounds = array<i64: 128, 128>}, {transform_indices = @transform_2, window_bounds = array<i64: 128, 128>}, {transform_indices = @transform_3, window_bounds = array<i64: 128, 1>}, {pipeline_mode = #tpu.pipeline_mode<synchronous>, transform_indices = @transform_4, window_bounds = array<i64: 128, 256>}, {pipeline_mode = #tpu.pipeline_mode<synchronous>, transform_indices = @transform_5, window_bounds = array<i64: 1, 256>}, {transform_indices = @transform_6, window_bounds = array<i64: 128, 128>}, {transform_indices = @transform_7, window_bounds = array<i64: 128, 128>}]} {
    %c0_i32 = arith.constant 0 : i32
    %0 = arith.cmpi eq, %arg1, %c0_i32 : i32
    %1 = arith.extui %0 : i1 to i32
    %c0_i32_0 = arith.constant 0 : i32
    %2 = arith.cmpi ne, %1, %c0_i32_0 : i32
    scf.if %2 {
      %cst_10 = arith.constant 0.000000e+00 : f32
      %12 = vector.broadcast %cst_10 : f32 to vector<128x128xf32>
      %c0_11 = arith.constant 0 : index
      %c0_12 = arith.constant 0 : index
      %13 = vector.load %arg10[%c0_11, %c0_12] : memref<128x128xf32, #tpu.memory_space<vmem>>, vector<128x128xf32>
      tpu.vector_store %arg10[%c0_11, %c0_12], %12 {strides = array<i32>} : memref<128x128xf32, #tpu.memory_space<vmem>>, vector<128x128xf32>,
    } else {
    }
    %c0 = arith.constant 0 : index
    %c0_1 = arith.constant 0 : index
    %3 = vector.load %arg10[%c0, %c0_1] : memref<128x128xf32, #tpu.memory_space<vmem>>, vector<128x128xf32>
    %c0_2 = arith.constant 0 : index
    %c0_3 = arith.constant 0 : index
    %4 = vector.load %arg2[%c0_2, %c0_3] : memref<128x128xbf16, #tpu.memory_space<vmem>>, vector<128x128xbf16>
    %c0_4 = arith.constant 0 : index
    %c0_5 = arith.constant 0 : index
    %5 = vector.load %arg3[%c0_4, %c0_5] : memref<128x128xbf16, #tpu.memory_space<vmem>>, vector<128x128xbf16>
    %cst = arith.constant dense<0.000000e+00> : vector<128x128xf32>
    %6 = tpu.matmul %4, %5, %cst {dimension_numbers = #tpu.dot_dimension_numbers<[1], [0], [0], [1], [0, 0, 1, 1], [], []>} : vector<128x128xbf16>, vector<128x128xbf16>, vector<128x128xf32> -> vector<128x128xf32>
    %7 = arith.addf %3, %6 : vector<128x128xf32>
    %c0_6 = arith.constant 0 : index
    %c0_7 = arith.constant 0 : index
    %8 = vector.load %arg10[%c0_6, %c0_7] : memref<128x128xf32, #tpu.memory_space<vmem>>, vector<128x128xf32>
    tpu.vector_store %arg10[%c0_6, %c0_7], %7 {strides = array<i32>} : memref<128x128xf32, #tpu.memory_space<vmem>>, vector<128x128xf32>,
    %c0_i32_8 = arith.constant 0 : i32
    %9 = arith.cmpi eq, %arg1, %c0_i32_8 : i32
    %10 = arith.extui %9 : i1 to i32
    %c0_i32_9 = arith.constant 0 : i32
    %11 = arith.cmpi ne, %10, %c0_i32_9 : i32
    scf.if %11 {
      %c0_10 = arith.constant 0 : index
      %c0_11 = arith.constant 0 : index
      %12 = vector.load %arg5[%c0_10, %c0_11] : memref<128x1xf32, #tpu.memory_space<vmem>>, vector<128x1xf32>
      %c0_12 = arith.constant 0 : index
      %c0_13 = arith.constant 0 : index
      %13 = vector.load %arg10[%c0_12, %c0_13] : memref<128x128xf32, #tpu.memory_space<vmem>>, vector<128x128xf32>
      %c0_14 = arith.constant 0 : index
      %c0_15 = arith.constant 0 : index
      %14 = vector.load %arg4[%c0_14, %c0_15] : memref<128x128xbf16, #tpu.memory_space<vmem>>, vector<128x128xbf16>
      %15 = arith.extf %14 : vector<128x128xbf16> to vector<128x128xf32>
      %16 = arith.addf %13, %15 : vector<128x128xf32>
      %17 = vector.broadcast %12 : vector<128x1xf32> to vector<128x128xf32>
      %18 = arith.mulf %17, %16 : vector<128x128xf32>
      %19 = arith.truncf %18 : vector<128x128xf32> to vector<128x128xbf16>
      %c0_16 = arith.constant 0 : index
      %c0_17 = arith.constant 0 : index
      %20 = vector.load %arg6[%c0_16, %c0_17] : memref<128x256xbf16, #tpu.memory_space<vmem>>, vector<128x256xbf16>
      %cst_18 = arith.constant dense<0.000000e+00> : vector<128x256xf32>
      %21 = tpu.matmul %19, %20, %cst_18 {dimension_numbers = #tpu.dot_dimension_numbers<[1], [0], [0], [1], [0, 0, 1, 1], [], []>} : vector<128x128xbf16>, vector<128x256xbf16>, vector<128x256xf32> -> vector<128x256xf32>
      %c0_19 = arith.constant 0 : index
      %c0_20 = arith.constant 0 : index
      %22 = vector.load %arg7[%c0_19, %c0_20] : memref<1x256xf32, #tpu.memory_space<vmem>>, vector<1x256xf32>
      %23 = vector.broadcast %22 : vector<1x256xf32> to vector<128x256xf32>
      %24 = arith.addf %21, %23 : vector<128x256xf32>
      %25 = vector.extract_strided_slice %24 {offsets = [0, 0], sizes = [128, 128], strides = [1, 1]} : vector<128x256xf32> to vector<128x128xf32>
      %cst_21 = arith.constant 0.000000e+00 : f32
      %26 = vector.broadcast %cst_21 : f32 to vector<128x128xf32>
      %27 = arith.maximumf %25, %26 : vector<128x128xf32>
      %c0_22 = arith.constant 0 : index
      %c0_23 = arith.constant 0 : index
      %28 = vector.load %arg5[%c0_22, %c0_23] : memref<128x1xf32, #tpu.memory_space<vmem>>, vector<128x1xf32>
      %29 = vector.broadcast %28 : vector<128x1xf32> to vector<128x128xf32>
      %30 = arith.mulf %29, %27 : vector<128x128xf32>
      %31 = arith.truncf %30 : vector<128x128xf32> to vector<128x128xbf16>
      %c0_24 = arith.constant 0 : index
      %c0_25 = arith.constant 0 : index
      %32 = vector.load %arg8[%c0_24, %c0_25] : memref<128x128xbf16, #tpu.memory_space<vmem>>, vector<128x128xbf16>
      tpu.vector_store %arg8[%c0_24, %c0_25], %31 {strides = array<i32>} : memref<128x128xbf16, #tpu.memory_space<vmem>>, vector<128x128xbf16>,
      %33 = vector.extract_strided_slice %24 {offsets = [0, 128], sizes = [128, 128], strides = [1, 1]} : vector<128x256xf32> to vector<128x128xf32>
      %34 = arith.truncf %33 : vector<128x128xf32> to vector<128x128xbf16>
      %c0_26 = arith.constant 0 : index
      %c0_27 = arith.constant 0 : index
      %35 = vector.load %arg9[%c0_26, %c0_27] : memref<128x128xbf16, #tpu.memory_space<vmem>>, vector<128x128xbf16>
      tpu.vector_store %arg9[%c0_26, %c0_27], %34 {strides = array<i32>} : memref<128x128xbf16, #tpu.memory_space<vmem>>, vector<128x128xbf16>,
    } else {
    }
    return
  }
  func.func @transform_0(%arg0: i32, %arg1: i32) -> (i32, i32) {
    %c0_i32 = arith.constant 0 : i32
    return %arg0, %arg1 : i32, i32
  }
  func.func @transform_1(%arg0: i32, %arg1: i32) -> (i32, i32) {
    %c0_i32 = arith.constant 0 : i32
    %c0_i32_0 = arith.constant 0 : i32
    return %arg1, %c0_i32 : i32, i32
  }
  func.func @transform_2(%arg0: i32, %arg1: i32) -> (i32, i32) {
    %c0_i32 = arith.constant 0 : i32
    %c0_i32_0 = arith.constant 0 : i32
    return %arg0, %c0_i32 : i32, i32
  }
  func.func @transform_3(%arg0: i32, %arg1: i32) -> (i32, i32) {
    %c0_i32 = arith.constant 0 : i32
    %c0_i32_0 = arith.constant 0 : i32
    return %arg0, %c0_i32 : i32, i32
  }
  func.func @transform_4(%arg0: i32, %arg1: i32) -> (i32, i32) {
    %c0_i32 = arith.constant 0 : i32
    %c0_i32_0 = arith.constant 0 : i32
    %c0_i32_1 = arith.constant 0 : i32
    return %c0_i32, %c0_i32_0 : i32, i32
  }
  func.func @transform_5(%arg0: i32, %arg1: i32) -> (i32, i32) {
    %c0_i32 = arith.constant 0 : i32
    %c0_i32_0 = arith.constant 0 : i32
    %c0_i32_1 = arith.constant 0 : i32
    return %c0_i32, %c0_i32_0 : i32, i32
  }
  func.func @transform_6(%arg0: i32, %arg1: i32) -> (i32, i32) {
    %c0_i32 = arith.constant 0 : i32
    %c0_i32_0 = arith.constant 0 : i32
    return %arg0, %c0_i32 : i32, i32
  }
  func.func @transform_7(%arg0: i32, %arg1: i32) -> (i32, i32) {
    %c0_i32 = arith.constant 0 : i32
    %c0_i32_0 = arith.constant 0 : i32
    return %arg0, %c0_i32 : i32, i32
  }
}

module attributes {stable_mosaic.version = 11 : i64} {
  func.func @_gcn_layer_kernel(%arg0: i32, %arg1: i32, %arg2: memref<128x128xbf16, #tpu.memory_space<vmem>>, %arg3: memref<128x128xbf16, #tpu.memory_space<vmem>>, %arg4: memref<128x128xbf16, #tpu.memory_space<vmem>>, %arg5: memref<128x1xf32, #tpu.memory_space<vmem>>, %arg6: memref<128x128xbf16, #tpu.memory_space<vmem>>, %arg7: memref<1x128xf32, #tpu.memory_space<vmem>>, %arg8: memref<128x128xf32, #tpu.memory_space<vmem>>, %arg9: memref<128x128xbf16, #tpu.memory_space<vmem>>, %arg10: memref<128x128xf32, #tpu.memory_space<vmem>>) attributes {dimension_semantics = [#tpu.dimension_semantics<parallel>, #tpu.dimension_semantics<arbitrary>], iteration_bounds = array<i64: 1, 1>, scalar_prefetch = 0 : i64, scratch_operands = 1 : i64, tpu.core_type = #tpu.core_type<tc>, window_params = [{transform_indices = @transform_0, window_bounds = array<i64: 128, 128>}, {transform_indices = @transform_1, window_bounds = array<i64: 128, 128>}, {transform_indices = @transform_2, window_bounds = array<i64: 128, 128>}, {transform_indices = @transform_3, window_bounds = array<i64: 128, 1>}, {pipeline_mode = #tpu.pipeline_mode<synchronous>, transform_indices = @transform_4, window_bounds = array<i64: 128, 128>}, {pipeline_mode = #tpu.pipeline_mode<synchronous>, transform_indices = @transform_5, window_bounds = array<i64: 1, 128>}, {transform_indices = @transform_6, window_bounds = array<i64: 128, 128>}, {transform_indices = @transform_7, window_bounds = array<i64: 128, 128>}]} {
    %c0_i32 = arith.constant 0 : i32
    %0 = arith.cmpi eq, %arg1, %c0_i32 : i32
    %1 = arith.extui %0 : i1 to i32
    %c0_i32_0 = arith.constant 0 : i32
    %2 = arith.cmpi ne, %1, %c0_i32_0 : i32
    scf.if %2 {
      %cst_10 = arith.constant 0.000000e+00 : f32
      %12 = vector.broadcast %cst_10 : f32 to vector<128x128xf32>
      %c0_11 = arith.constant 0 : index
      %c0_12 = arith.constant 0 : index
      %13 = vector.load %arg10[%c0_11, %c0_12] : memref<128x128xf32, #tpu.memory_space<vmem>>, vector<128x128xf32>
      tpu.vector_store %arg10[%c0_11, %c0_12], %12 {strides = array<i32>} : memref<128x128xf32, #tpu.memory_space<vmem>>, vector<128x128xf32>,
    } else {
    }
    %c0 = arith.constant 0 : index
    %c0_1 = arith.constant 0 : index
    %3 = vector.load %arg10[%c0, %c0_1] : memref<128x128xf32, #tpu.memory_space<vmem>>, vector<128x128xf32>
    %c0_2 = arith.constant 0 : index
    %c0_3 = arith.constant 0 : index
    %4 = vector.load %arg2[%c0_2, %c0_3] : memref<128x128xbf16, #tpu.memory_space<vmem>>, vector<128x128xbf16>
    %c0_4 = arith.constant 0 : index
    %c0_5 = arith.constant 0 : index
    %5 = vector.load %arg3[%c0_4, %c0_5] : memref<128x128xbf16, #tpu.memory_space<vmem>>, vector<128x128xbf16>
    %cst = arith.constant dense<0.000000e+00> : vector<128x128xf32>
    %6 = tpu.matmul %4, %5, %cst {dimension_numbers = #tpu.dot_dimension_numbers<[1], [0], [0], [1], [0, 0, 1, 1], [], []>} : vector<128x128xbf16>, vector<128x128xbf16>, vector<128x128xf32> -> vector<128x128xf32>
    %7 = arith.addf %3, %6 : vector<128x128xf32>
    %c0_6 = arith.constant 0 : index
    %c0_7 = arith.constant 0 : index
    %8 = vector.load %arg10[%c0_6, %c0_7] : memref<128x128xf32, #tpu.memory_space<vmem>>, vector<128x128xf32>
    tpu.vector_store %arg10[%c0_6, %c0_7], %7 {strides = array<i32>} : memref<128x128xf32, #tpu.memory_space<vmem>>, vector<128x128xf32>,
    %c0_i32_8 = arith.constant 0 : i32
    %9 = arith.cmpi eq, %arg1, %c0_i32_8 : i32
    %10 = arith.extui %9 : i1 to i32
    %c0_i32_9 = arith.constant 0 : i32
    %11 = arith.cmpi ne, %10, %c0_i32_9 : i32
    scf.if %11 {
      %c0_10 = arith.constant 0 : index
      %c0_11 = arith.constant 0 : index
      %12 = vector.load %arg5[%c0_10, %c0_11] : memref<128x1xf32, #tpu.memory_space<vmem>>, vector<128x1xf32>
      %c0_12 = arith.constant 0 : index
      %c0_13 = arith.constant 0 : index
      %13 = vector.load %arg10[%c0_12, %c0_13] : memref<128x128xf32, #tpu.memory_space<vmem>>, vector<128x128xf32>
      %c0_14 = arith.constant 0 : index
      %c0_15 = arith.constant 0 : index
      %14 = vector.load %arg4[%c0_14, %c0_15] : memref<128x128xbf16, #tpu.memory_space<vmem>>, vector<128x128xbf16>
      %15 = arith.extf %14 : vector<128x128xbf16> to vector<128x128xf32>
      %16 = arith.addf %13, %15 : vector<128x128xf32>
      %17 = vector.broadcast %12 : vector<128x1xf32> to vector<128x128xf32>
      %18 = arith.mulf %17, %16 : vector<128x128xf32>
      %19 = arith.truncf %18 : vector<128x128xf32> to vector<128x128xbf16>
      %c0_16 = arith.constant 0 : index
      %c0_17 = arith.constant 0 : index
      %20 = vector.load %arg6[%c0_16, %c0_17] : memref<128x128xbf16, #tpu.memory_space<vmem>>, vector<128x128xbf16>
      %cst_18 = arith.constant dense<0.000000e+00> : vector<128x128xf32>
      %21 = tpu.matmul %19, %20, %cst_18 {dimension_numbers = #tpu.dot_dimension_numbers<[1], [0], [0], [1], [0, 0, 1, 1], [], []>} : vector<128x128xbf16>, vector<128x128xbf16>, vector<128x128xf32> -> vector<128x128xf32>
      %c0_19 = arith.constant 0 : index
      %c0_20 = arith.constant 0 : index
      %22 = vector.load %arg7[%c0_19, %c0_20] : memref<1x128xf32, #tpu.memory_space<vmem>>, vector<1x128xf32>
      %23 = vector.broadcast %22 : vector<1x128xf32> to vector<128x128xf32>
      %24 = arith.addf %21, %23 : vector<128x128xf32>
      %c0_21 = arith.constant 0 : index
      %c0_22 = arith.constant 0 : index
      %25 = vector.load %arg8[%c0_21, %c0_22] : memref<128x128xf32, #tpu.memory_space<vmem>>, vector<128x128xf32>
      tpu.vector_store %arg8[%c0_21, %c0_22], %24 {strides = array<i32>} : memref<128x128xf32, #tpu.memory_space<vmem>>, vector<128x128xf32>,
      %c0_23 = arith.constant 0 : index
      %c0_24 = arith.constant 0 : index
      %26 = vector.load %arg5[%c0_23, %c0_24] : memref<128x1xf32, #tpu.memory_space<vmem>>, vector<128x1xf32>
      %27 = vector.broadcast %26 : vector<128x1xf32> to vector<128x128xf32>
      %28 = arith.mulf %27, %24 : vector<128x128xf32>
      %29 = arith.truncf %28 : vector<128x128xf32> to vector<128x128xbf16>
      %c0_25 = arith.constant 0 : index
      %c0_26 = arith.constant 0 : index
      %30 = vector.load %arg9[%c0_25, %c0_26] : memref<128x128xbf16, #tpu.memory_space<vmem>>, vector<128x128xbf16>
      tpu.vector_store %arg9[%c0_25, %c0_26], %29 {strides = array<i32>} : memref<128x128xbf16, #tpu.memory_space<vmem>>, vector<128x128xbf16>,
    } else {
    }
    return
  }
  func.func @transform_0(%arg0: i32, %arg1: i32) -> (i32, i32) {
    %c0_i32 = arith.constant 0 : i32
    return %arg0, %arg1 : i32, i32
  }
  func.func @transform_1(%arg0: i32, %arg1: i32) -> (i32, i32) {
    %c0_i32 = arith.constant 0 : i32
    %c0_i32_0 = arith.constant 0 : i32
    return %arg1, %c0_i32 : i32, i32
  }
  func.func @transform_2(%arg0: i32, %arg1: i32) -> (i32, i32) {
    %c0_i32 = arith.constant 0 : i32
    %c0_i32_0 = arith.constant 0 : i32
    return %arg0, %c0_i32 : i32, i32
  }
  func.func @transform_3(%arg0: i32, %arg1: i32) -> (i32, i32) {
    %c0_i32 = arith.constant 0 : i32
    %c0_i32_0 = arith.constant 0 : i32
    return %arg0, %c0_i32 : i32, i32
  }
  func.func @transform_4(%arg0: i32, %arg1: i32) -> (i32, i32) {
    %c0_i32 = arith.constant 0 : i32
    %c0_i32_0 = arith.constant 0 : i32
    %c0_i32_1 = arith.constant 0 : i32
    return %c0_i32, %c0_i32_0 : i32, i32
  }
  func.func @transform_5(%arg0: i32, %arg1: i32) -> (i32, i32) {
    %c0_i32 = arith.constant 0 : i32
    %c0_i32_0 = arith.constant 0 : i32
    %c0_i32_1 = arith.constant 0 : i32
    return %c0_i32, %c0_i32_0 : i32, i32
  }
  func.func @transform_6(%arg0: i32, %arg1: i32) -> (i32, i32) {
    %c0_i32 = arith.constant 0 : i32
    %c0_i32_0 = arith.constant 0 : i32
    return %arg0, %c0_i32 : i32, i32
  }
  func.func @transform_7(%arg0: i32, %arg1: i32) -> (i32, i32) {
    %c0_i32 = arith.constant 0 : i32
    %c0_i32_0 = arith.constant 0 : i32
    return %arg0, %c0_i32 : i32, i32
  }
}

module attributes {stable_mosaic.version = 11 : i64} {
  func.func @_gcn_layer_kernel(%arg0: i32, %arg1: i32, %arg2: memref<128x128xbf16, #tpu.memory_space<vmem>>, %arg3: memref<128x128xbf16, #tpu.memory_space<vmem>>, %arg4: memref<128x128xbf16, #tpu.memory_space<vmem>>, %arg5: memref<128x1xf32, #tpu.memory_space<vmem>>, %arg6: memref<128x128xbf16, #tpu.memory_space<vmem>>, %arg7: memref<1x128xf32, #tpu.memory_space<vmem>>, %arg8: memref<128x128xf32, #tpu.memory_space<vmem>>, %arg9: memref<128x128xbf16, #tpu.memory_space<vmem>>, %arg10: memref<128x128xf32, #tpu.memory_space<vmem>>) attributes {dimension_semantics = [#tpu.dimension_semantics<parallel>, #tpu.dimension_semantics<arbitrary>], iteration_bounds = array<i64: 1, 1>, scalar_prefetch = 0 : i64, scratch_operands = 1 : i64, tpu.core_type = #tpu.core_type<tc>, window_params = [{transform_indices = @transform_0, window_bounds = array<i64: 128, 128>}, {transform_indices = @transform_1, window_bounds = array<i64: 128, 128>}, {transform_indices = @transform_2, window_bounds = array<i64: 128, 128>}, {transform_indices = @transform_3, window_bounds = array<i64: 128, 1>}, {pipeline_mode = #tpu.pipeline_mode<synchronous>, transform_indices = @transform_4, window_bounds = array<i64: 128, 128>}, {pipeline_mode = #tpu.pipeline_mode<synchronous>, transform_indices = @transform_5, window_bounds = array<i64: 1, 128>}, {transform_indices = @transform_6, window_bounds = array<i64: 128, 128>}, {transform_indices = @transform_7, window_bounds = array<i64: 128, 128>}]} {
    %c0_i32 = arith.constant 0 : i32
    %0 = arith.cmpi eq, %arg1, %c0_i32 : i32
    %1 = arith.extui %0 : i1 to i32
    %c0_i32_0 = arith.constant 0 : i32
    %2 = arith.cmpi ne, %1, %c0_i32_0 : i32
    scf.if %2 {
      %cst_10 = arith.constant 0.000000e+00 : f32
      %12 = vector.broadcast %cst_10 : f32 to vector<128x128xf32>
      %c0_11 = arith.constant 0 : index
      %c0_12 = arith.constant 0 : index
      %13 = vector.load %arg10[%c0_11, %c0_12] : memref<128x128xf32, #tpu.memory_space<vmem>>, vector<128x128xf32>
      tpu.vector_store %arg10[%c0_11, %c0_12], %12 {strides = array<i32>} : memref<128x128xf32, #tpu.memory_space<vmem>>, vector<128x128xf32>,
    } else {
    }
    %c0 = arith.constant 0 : index
    %c0_1 = arith.constant 0 : index
    %3 = vector.load %arg10[%c0, %c0_1] : memref<128x128xf32, #tpu.memory_space<vmem>>, vector<128x128xf32>
    %c0_2 = arith.constant 0 : index
    %c0_3 = arith.constant 0 : index
    %4 = vector.load %arg2[%c0_2, %c0_3] : memref<128x128xbf16, #tpu.memory_space<vmem>>, vector<128x128xbf16>
    %c0_4 = arith.constant 0 : index
    %c0_5 = arith.constant 0 : index
    %5 = vector.load %arg3[%c0_4, %c0_5] : memref<128x128xbf16, #tpu.memory_space<vmem>>, vector<128x128xbf16>
    %cst = arith.constant dense<0.000000e+00> : vector<128x128xf32>
    %6 = tpu.matmul %4, %5, %cst {dimension_numbers = #tpu.dot_dimension_numbers<[1], [0], [0], [1], [0, 0, 1, 1], [], []>} : vector<128x128xbf16>, vector<128x128xbf16>, vector<128x128xf32> -> vector<128x128xf32>
    %7 = arith.addf %3, %6 : vector<128x128xf32>
    %c0_6 = arith.constant 0 : index
    %c0_7 = arith.constant 0 : index
    %8 = vector.load %arg10[%c0_6, %c0_7] : memref<128x128xf32, #tpu.memory_space<vmem>>, vector<128x128xf32>
    tpu.vector_store %arg10[%c0_6, %c0_7], %7 {strides = array<i32>} : memref<128x128xf32, #tpu.memory_space<vmem>>, vector<128x128xf32>,
    %c0_i32_8 = arith.constant 0 : i32
    %9 = arith.cmpi eq, %arg1, %c0_i32_8 : i32
    %10 = arith.extui %9 : i1 to i32
    %c0_i32_9 = arith.constant 0 : i32
    %11 = arith.cmpi ne, %10, %c0_i32_9 : i32
    scf.if %11 {
      %c0_10 = arith.constant 0 : index
      %c0_11 = arith.constant 0 : index
      %12 = vector.load %arg5[%c0_10, %c0_11] : memref<128x1xf32, #tpu.memory_space<vmem>>, vector<128x1xf32>
      %c0_12 = arith.constant 0 : index
      %c0_13 = arith.constant 0 : index
      %13 = vector.load %arg10[%c0_12, %c0_13] : memref<128x128xf32, #tpu.memory_space<vmem>>, vector<128x128xf32>
      %c0_14 = arith.constant 0 : index
      %c0_15 = arith.constant 0 : index
      %14 = vector.load %arg4[%c0_14, %c0_15] : memref<128x128xbf16, #tpu.memory_space<vmem>>, vector<128x128xbf16>
      %15 = arith.extf %14 : vector<128x128xbf16> to vector<128x128xf32>
      %16 = arith.addf %13, %15 : vector<128x128xf32>
      %17 = vector.broadcast %12 : vector<128x1xf32> to vector<128x128xf32>
      %18 = arith.mulf %17, %16 : vector<128x128xf32>
      %19 = arith.truncf %18 : vector<128x128xf32> to vector<128x128xbf16>
      %c0_16 = arith.constant 0 : index
      %c0_17 = arith.constant 0 : index
      %20 = vector.load %arg6[%c0_16, %c0_17] : memref<128x128xbf16, #tpu.memory_space<vmem>>, vector<128x128xbf16>
      %cst_18 = arith.constant dense<0.000000e+00> : vector<128x128xf32>
      %21 = tpu.matmul %19, %20, %cst_18 {dimension_numbers = #tpu.dot_dimension_numbers<[1], [0], [0], [1], [0, 0, 1, 1], [], []>} : vector<128x128xbf16>, vector<128x128xbf16>, vector<128x128xf32> -> vector<128x128xf32>
      %c0_19 = arith.constant 0 : index
      %c0_20 = arith.constant 0 : index
      %22 = vector.load %arg7[%c0_19, %c0_20] : memref<1x128xf32, #tpu.memory_space<vmem>>, vector<1x128xf32>
      %23 = vector.broadcast %22 : vector<1x128xf32> to vector<128x128xf32>
      %24 = arith.addf %21, %23 : vector<128x128xf32>
      %c0_21 = arith.constant 0 : index
      %c0_22 = arith.constant 0 : index
      %25 = vector.load %arg8[%c0_21, %c0_22] : memref<128x128xf32, #tpu.memory_space<vmem>>, vector<128x128xf32>
      tpu.vector_store %arg8[%c0_21, %c0_22], %24 {strides = array<i32>} : memref<128x128xf32, #tpu.memory_space<vmem>>, vector<128x128xf32>,
      %c0_23 = arith.constant 0 : index
      %c0_24 = arith.constant 0 : index
      %26 = vector.load %arg5[%c0_23, %c0_24] : memref<128x1xf32, #tpu.memory_space<vmem>>, vector<128x1xf32>
      %27 = vector.broadcast %26 : vector<128x1xf32> to vector<128x128xf32>
      %28 = arith.mulf %27, %24 : vector<128x128xf32>
      %29 = arith.truncf %28 : vector<128x128xf32> to vector<128x128xbf16>
      %c0_25 = arith.constant 0 : index
      %c0_26 = arith.constant 0 : index
      %30 = vector.load %arg9[%c0_25, %c0_26] : memref<128x128xbf16, #tpu.memory_space<vmem>>, vector<128x128xbf16>
      tpu.vector_store %arg9[%c0_25, %c0_26], %29 {strides = array<i32>} : memref<128x128xbf16, #tpu.memory_space<vmem>>, vector<128x128xbf16>,
    } else {
    }
    return
  }
  func.func @transform_0(%arg0: i32, %arg1: i32) -> (i32, i32) {
    %c0_i32 = arith.constant 0 : i32
    return %arg0, %arg1 : i32, i32
  }
  func.func @transform_1(%arg0: i32, %arg1: i32) -> (i32, i32) {
    %c0_i32 = arith.constant 0 : i32
    %c0_i32_0 = arith.constant 0 : i32
    return %arg1, %c0_i32 : i32, i32
  }
  func.func @transform_2(%arg0: i32, %arg1: i32) -> (i32, i32) {
    %c0_i32 = arith.constant 0 : i32
    %c0_i32_0 = arith.constant 0 : i32
    return %arg0, %c0_i32 : i32, i32
  }
  func.func @transform_3(%arg0: i32, %arg1: i32) -> (i32, i32) {
    %c0_i32 = arith.constant 0 : i32
    %c0_i32_0 = arith.constant 0 : i32
    return %arg0, %c0_i32 : i32, i32
  }
  func.func @transform_4(%arg0: i32, %arg1: i32) -> (i32, i32) {
    %c0_i32 = arith.constant 0 : i32
    %c0_i32_0 = arith.constant 0 : i32
    %c0_i32_1 = arith.constant 0 : i32
    return %c0_i32, %c0_i32_0 : i32, i32
  }
  func.func @transform_5(%arg0: i32, %arg1: i32) -> (i32, i32) {
    %c0_i32 = arith.constant 0 : i32
    %c0_i32_0 = arith.constant 0 : i32
    %c0_i32_1 = arith.constant 0 : i32
    return %c0_i32, %c0_i32_0 : i32, i32
  }
  func.func @transform_6(%arg0: i32, %arg1: i32) -> (i32, i32) {
    %c0_i32 = arith.constant 0 : i32
    %c0_i32_0 = arith.constant 0 : i32
    return %arg0, %c0_i32 : i32, i32
  }
  func.func @transform_7(%arg0: i32, %arg1: i32) -> (i32, i32) {
    %c0_i32 = arith.constant 0 : i32
    %c0_i32_0 = arith.constant 0 : i32
    return %arg0, %c0_i32 : i32, i32
  }
}

module attributes {stable_mosaic.version = 11 : i64} {
  func.func @_dot_decoder_kernel(%arg0: i32, %arg1: i32, %arg2: memref<128x128xbf16, #tpu.memory_space<vmem>>, %arg3: memref<128x128xbf16, #tpu.memory_space<vmem>>, %arg4: memref<128x128xf32, #tpu.memory_space<vmem>>) attributes {dimension_semantics = [#tpu.dimension_semantics<parallel>, #tpu.dimension_semantics<parallel>], iteration_bounds = array<i64: 1, 1>, scalar_prefetch = 0 : i64, scratch_operands = 0 : i64, tpu.core_type = #tpu.core_type<tc>, window_params = [{transform_indices = @transform_0, window_bounds = array<i64: 128, 128>}, {transform_indices = @transform_1, window_bounds = array<i64: 128, 128>}, {transform_indices = @transform_2, window_bounds = array<i64: 128, 128>}]} {
    %c0 = arith.constant 0 : index
    %c0_0 = arith.constant 0 : index
    %0 = vector.load %arg2[%c0, %c0_0] : memref<128x128xbf16, #tpu.memory_space<vmem>>, vector<128x128xbf16>
    %c0_1 = arith.constant 0 : index
    %c0_2 = arith.constant 0 : index
    %1 = vector.load %arg3[%c0_1, %c0_2] : memref<128x128xbf16, #tpu.memory_space<vmem>>, vector<128x128xbf16>
    %cst = arith.constant dense<0.000000e+00> : vector<128x128xf32>
    %2 = tpu.matmul %0, %1, %cst {dimension_numbers = #tpu.dot_dimension_numbers<[1], [1], [0], [0], [0, 0, 1, 0], [], []>} : vector<128x128xbf16>, vector<128x128xbf16>, vector<128x128xf32> -> vector<128x128xf32>
    %c0_3 = arith.constant 0 : index
    %c0_4 = arith.constant 0 : index
    %3 = vector.load %arg4[%c0_3, %c0_4] : memref<128x128xf32, #tpu.memory_space<vmem>>, vector<128x128xf32>
    tpu.vector_store %arg4[%c0_3, %c0_4], %2 {strides = array<i32>} : memref<128x128xf32, #tpu.memory_space<vmem>>, vector<128x128xf32>,
    return
  }
  func.func @transform_0(%arg0: i32, %arg1: i32) -> (i32, i32) {
    %c0_i32 = arith.constant 0 : i32
    %c0_i32_0 = arith.constant 0 : i32
    return %arg0, %c0_i32 : i32, i32
  }
  func.func @transform_1(%arg0: i32, %arg1: i32) -> (i32, i32) {
    %c0_i32 = arith.constant 0 : i32
    %c0_i32_0 = arith.constant 0 : i32
    return %arg1, %c0_i32 : i32, i32
  }
  func.func @transform_2(%arg0: i32, %arg1: i32) -> (i32, i32) {
    %c0_i32 = arith.constant 0 : i32
    return %arg0, %arg1 : i32, i32
  }
}

</mosaic_0001>

<bundles_post_ra>
// kernel: dominant_forward.7
= control target key start
LH: loop header
LB: loop body
LE: loop exit
PB: predicated region body
PF: predicated region fallthrough
CT: control target
= control target key end

     0   :  { %s464_s1 = inlined_call_operand.vmem [shape: bf16[128,128], index: 1, kind: input, shape index: {}, may-alias: {0,1}]   ;;  %s465_s0 = inlined_call_operand.vmem [shape: bf16[128,128], index: 0, kind: input, shape index: {}, may-alias: {0,1}]   ;;  %s466_s2 = inlined_call_operand.vmem [shape: f32[128,128], index: 2, kind: output, shape index: {}]  }
   0x1   :  { %v337_v0 = vld [vmem:[%s464_s1 + $0x38] sm:$0xff]   ;;  %v338_v1 = vld [vmem:[%s464_s1 + $0x30] sm:$0xff]   ;;  %v339_v2 = vld [vmem:[%s464_s1 + $0x28] sm:$0xff]  }
   0x2   :  { %289 = vmatprep.subr.bf16.mxu0 %v337_v0  ;;  %321 = vmatprep.subr.bf16.mxu1 %v337_v0  ;;  %v345_v3 = vld [vmem:[%s465_s0] sm:$0xff]   ;;  %v341_v6 = vld [vmem:[%s464_s1 + $0x18] sm:$0xff]   ;;  %v342_v7 = vld [vmem:[%s464_s1 + $0x10] sm:$0xff]  }
   0x3   :  { %290 = vmatpush3.bf16.xpose.msra.mxu0 %v337_v0  ;;  %329 = vmatpush3.bf16.xpose.msra.mxu1 %v337_v0  ;;  %v346_v4 = vld [vmem:[%s465_s0 + $0x20] sm:$0xff]   ;;  %v343_v8 = vld [vmem:[%s464_s1 + $0x8] sm:$0xff]   ;;  %v349_v12 = vld [vmem:[%s465_s0 + $0x10] sm:$0xff]  }
   0x4   :  { %291 = vmatprep.subr.bf16.mxu0 %v338_v1  ;;  %322 = vmatprep.subr.bf16.mxu1 %v338_v1  ;;  %v340_v5 = vld [vmem:[%s464_s1 + $0x20] sm:$0xff]   ;;  %v347_v10 = vld [vmem:[%s465_s0 + $0x8] sm:$0xff]   ;;  %v350_v13 = vld [vmem:[%s465_s0 + $0x30] sm:$0xff]  }
   0x5   :  { %305 = vmatprep.mubr.bf16.mxu0 %v345_v3  ;;  %313 = vmatprep.mubr.bf16.mxu1 %v346_v4  ;;  %v344_v9 = vld [vmem:[%s464_s1] sm:$0xff]   ;;  %v348_v11 = vld [vmem:[%s465_s0 + $0x28] sm:$0xff]   ;;  %v351_v14 = vld [vmem:[%s465_s0 + $0x18] sm:$0xff]  }
   0x6   :  { %v352_v15 = vld [vmem:[%s465_s0 + $0x38] sm:$0xff]  }
   0xb   :  { %292 = vmatpush3.bf16.xpose.msra.mxu0 %v338_v1  ;;  %330 = vmatpush3.bf16.xpose.msra.mxu1 %v338_v1 }
   0xc   :  { %293 = vmatprep.subr.bf16.mxu0 %v339_v2  ;;  %323 = vmatprep.subr.bf16.mxu1 %v339_v2 }
  0x13   :  { %294 = vmatpush3.bf16.xpose.msra.mxu0 %v339_v2  ;;  %331 = vmatpush3.bf16.xpose.msra.mxu1 %v339_v2 }
  0x14   :  { %295 = vmatprep.subr.bf16.mxu0 %v340_v5  ;;  %324 = vmatprep.subr.bf16.mxu1 %v340_v5 }
  0x1b   :  { %296 = vmatpush3.bf16.xpose.msra.mxu0 %v340_v5  ;;  %332 = vmatpush3.bf16.xpose.msra.mxu1 %v340_v5 }
  0x1c   :  { %297 = vmatprep.subr.bf16.mxu0 %v341_v6  ;;  %325 = vmatprep.subr.bf16.mxu1 %v341_v6 }
  0x23   :  { %298 = vmatpush3.bf16.xpose.msra.mxu0 %v341_v6  ;;  %333 = vmatpush3.bf16.xpose.msra.mxu1 %v341_v6 }
  0x24   :  { %299 = vmatprep.subr.bf16.mxu0 %v342_v7  ;;  %326 = vmatprep.subr.bf16.mxu1 %v342_v7 }
  0x2b   :  { %300 = vmatpush3.bf16.xpose.msra.mxu0 %v342_v7  ;;  %334 = vmatpush3.bf16.xpose.msra.mxu1 %v342_v7 }
  0x2c   :  { %301 = vmatprep.subr.bf16.mxu0 %v343_v8  ;;  %327 = vmatprep.subr.bf16.mxu1 %v343_v8 }
  0x33   :  { %302 = vmatpush3.bf16.xpose.msra.mxu0 %v343_v8  ;;  %335 = vmatpush3.bf16.xpose.msra.mxu1 %v343_v8 }
  0x34   :  { %303 = vmatprep.subr.bf16.mxu0 %v344_v9  ;;  %328 = vmatprep.subr.bf16.mxu1 %v344_v9 }
  0x3b   :  { %304 = vmatpush3.bf16.xpose.msra.mxu0 %v344_v9  ;;  %336 = vmatpush3.bf16.xpose.msra.mxu1 %v344_v9 }
  0x42   :  { %306 = vmatmul.mubr.bf16.vlgmr.msra.gmra.mxu0 %v347_v10  ;;  %314 = vmatmul.mubr.bf16.vlgmr.msra.gmra.mxu1 %v348_v11 }
  0x43   :  { %309 = vmatprep.mubr.bf16.mxu0 %v349_v12  ;;  %317 = vmatprep.mubr.bf16.mxu1 %v350_v13 }
  0x4a   :  { %310 = vmatmul.mubr.bf16.gmra.mxu0 %v351_v14  ;;  %318 = vmatmul.mubr.bf16.gmra.mxu1 %v352_v15 }
 0x102   :  { %v307_v16 = vpop.f32.mrf.mxu0  ;;  %v315_v17 = vpop.f32.mrf.mxu1 }
 0x103   :  { %239 = vst [vmem:[%s466_s2 + $0x10] sm:$0xff] %v307_v16  ;;  %247 = vst [vmem:[%s466_s2 + $0x50] sm:$0xff] %v315_v17 }
 0x104   :  { %v174_v18 = vpop.f32.mrf.mxu0  ;;  %v206_v19 = vpop.f32.mrf.mxu1 }
 0x105   :  { %237 = vst [vmem:[%s466_s2] sm:$0xff] %v174_v18  ;;  %245 = vst [vmem:[%s466_s2 + $0x40] sm:$0xff] %v206_v19 }
 0x106   :  { %v308_v20 = vpop.f32.mrf.mxu0  ;;  %v316_v21 = vpop.f32.mrf.mxu1 }
 0x107   :  { %240 = vst [vmem:[%s466_s2 + $0x18] sm:$0xff] %v308_v20  ;;  %248 = vst [vmem:[%s466_s2 + $0x58] sm:$0xff] %v316_v21 }
 0x108   :  { %v177_v22 = vpop.f32.mrf.mxu0  ;;  %v209_v23 = vpop.f32.mrf.mxu1 }
 0x109   :  { %238 = vst [vmem:[%s466_s2 + $0x8] sm:$0xff] %v177_v22  ;;  %246 = vst [vmem:[%s466_s2 + $0x48] sm:$0xff] %v209_v23 }
 0x10a   :  { %v311_v24 = vpop.f32.mrf.mxu0  ;;  %v319_v25 = vpop.f32.mrf.mxu1 }
 0x10b   :  { %243 = vst [vmem:[%s466_s2 + $0x30] sm:$0xff] %v311_v24  ;;  %251 = vst [vmem:[%s466_s2 + $0x70] sm:$0xff] %v319_v25 }
 0x10c   :  { %v190_v26 = vpop.f32.mrf.mxu0  ;;  %v222_v27 = vpop.f32.mrf.mxu1 }
 0x10d   :  { %241 = vst [vmem:[%s466_s2 + $0x20] sm:$0xff] %v190_v26  ;;  %249 = vst [vmem:[%s466_s2 + $0x60] sm:$0xff] %v222_v27 }
 0x10e   :  { %v312_v28 = vpop.f32.mrf.mxu0  ;;  %v320_v29 = vpop.f32.mrf.mxu1 }
 0x10f   :  { %244 = vst [vmem:[%s466_s2 + $0x38] sm:$0xff] %v312_v28  ;;  %252 = vst [vmem:[%s466_s2 + $0x78] sm:$0xff] %v320_v29 }
 0x110   :  { %v193_v30 = vpop.f32.mrf.mxu0  ;;  %v225_v31 = vpop.f32.mrf.mxu1 }
 0x111   :  { %242 = vst [vmem:[%s466_s2 + $0x28] sm:$0xff] %v193_v30  ;;  %250 = vst [vmem:[%s466_s2 + $0x68] sm:$0xff] %v225_v31 }

// kernel: dominant_forward.4
= control target key start
LH: loop header
LB: loop body
LE: loop exit
PB: predicated region body
PF: predicated region fallthrough
CT: control target
= control target key end

     0   :  { %v1194_v2 = vmov 0   ;;  %s1430_s0 = inlined_call_operand.vmem [shape: bf16[128,128], index: 0, kind: input, shape index: {}]   ;;  %s1431_s1 = inlined_call_operand.vmem [shape: bf16[128,128], index: 1, kind: input, shape index: {}, may-alias: {1,2}]   ;;  %s1432_s2 = inlined_call_operand.vmem [shape: bf16[128,128], index: 2, kind: input, shape index: {}, may-alias: {1,2}]   ;;  %s1433_s3 = inlined_call_operand.vmem [shape: f32[128,1], index: 3, kind: input, shape index: {}]   ;;  %s1434_s4 = inlined_call_operand.vmem [shape: bf16[128,128], index: 4, kind: input, shape index: {}]   ;;  %s1435_s5 = inlined_call_operand.vmem [shape: f32[1,128], index: 5, kind: input, shape index: {}]   ;;  %s1436_s6 = inlined_call_operand.hbm [shape: f32[128,128], index: 6, kind: output, shape index: {0}]   ;;  %s1437_s7 = inlined_call_operand.vmem [shape: bf16[128,128], index: 7, kind: output, shape index: {1}]  }
   0x1   :  { %v1148_v0 = vld [vmem:[%s1431_s1 + $0x38] sm:$0xff]   ;;  %v1149_v1 = vld [vmem:[%s1431_s1 + $0x30] sm:$0xff]   ;;  %1146 = vset.pattern.permute.xlu0 %v1194_v2  ;;  %1147 = vset.pattern.permute.xlu1 %v1194_v2  ;;  %v1150_v3 = vld [vmem:[%s1431_s1 + $0x28] sm:$0xff]  }
   0x2   :  { %1078 = vmatprep.subr.bf16.mxu0 %v1148_v0  ;;  %v1151_v4 = vld [vmem:[%s1431_s1 + $0x20] sm:$0xff]   ;;  %v1152_v6 = vld [vmem:[%s1431_s1 + $0x18] sm:$0xff]   ;;  %v325_v8 = vld [vmem:[%s1433_s3 + $0x10] sm:$0xff] }
   0x3   :  { %1079 = vmatpush3.bf16.msra.mxu0 %v1148_v0  ;;  %v1156_v5 = vld [vmem:[%s1430_s0] sm:$0xff]   ;;  %415 = vperm.xlu1 %1147, %v325_v8   ;;  %v324_v9 = vld [vmem:[%s1433_s3 + $0x8] sm:$0xff]  ;;  %v326_v10 = vld [vmem:[%s1433_s3 + $0x18] sm:$0xff] }
   0x4   :  { %1080 = vmatprep.subr.bf16.mxu0 %v1149_v1  ;;  %1094 = vmatprep.mubr.bf16.mxu0 %v1156_v5  ;;  %v323_v7 = vld [vmem:[%s1433_s3] sm:$0xff]  ;;  %v1153_v11 = vld [vmem:[%s1431_s1 + $0x10] sm:$0xff]   ;;  %v328_v13 = vld [vmem:[%s1433_s3 + $0x28] sm:$0xff] }
   0x5   :  { %405 = vperm.xlu0 %1146, %v323_v7   ;;  %v327_v12 = vld [vmem:[%s1433_s3 + $0x20] sm:$0xff]  ;;  %v1154_v14 = vld [vmem:[%s1431_s1 + $0x8] sm:$0xff]   ;;  %v329_v15 = vld [vmem:[%s1433_s3 + $0x30] sm:$0xff] }
   0x6   :  { %v330_v16 = vld [vmem:[%s1433_s3 + $0x38] sm:$0xff]  ;;  %v1155_v17 = vld [vmem:[%s1431_s1] sm:$0xff]   ;;  %v332_v19 = vld [vmem:[%s1433_s3 + $0x48] sm:$0xff] }
   0x7   :  { %1081 = vmatpush3.bf16.msra.mxu0 %v1149_v1  ;;  %420 = vperm.xlu1 %1147, %v326_v10   ;;  %v331_v18 = vld [vmem:[%s1433_s3 + $0x40] sm:$0xff] }
   0x8   :  { %1082 = vmatprep.subr.bf16.mxu0 %v1150_v3 }
   0x9   :  { %410 = vperm.xlu0 %1146, %v324_v9  }
   0xb   :  { %1083 = vmatpush3.bf16.msra.mxu0 %v1150_v3  ;;  %430 = vperm.xlu1 %1147, %v328_v13  }
   0xc   :  { %1084 = vmatprep.subr.bf16.mxu0 %v1151_v4 }
   0xd   :  { %425 = vperm.xlu0 %1146, %v327_v12  }
   0xf   :  { %1085 = vmatpush3.bf16.msra.mxu0 %v1151_v4  ;;  %440 = vperm.xlu1 %1147, %v330_v16  }
  0x10   :  { %1086 = vmatprep.subr.bf16.mxu0 %v1152_v6 }
  0x11   :  { %435 = vperm.xlu0 %1146, %v329_v15  }
  0x13   :  { %1087 = vmatpush3.bf16.msra.mxu0 %v1152_v6 }
  0x14   :  { %1088 = vmatprep.subr.bf16.mxu0 %v1153_v11 }
  0x17   :  { %1089 = vmatpush3.bf16.msra.mxu0 %v1153_v11 }
  0x18   :  { %1090 = vmatprep.subr.bf16.mxu0 %v1154_v14 }
  0x19   :  { %13 = vsyncpa [#allocation4], 0  ;;  %445 = vperm.xlu0 %1146, %v331_v18   ;;  %450 = vperm.xlu1 %1147, %v332_v19   ;;  %v1157_v20 = vld [vmem:[%s1430_s0 + $0x8] sm:$0xff]   ;;  %v333_v21 = vld [vmem:[%s1433_s3 + $0x50] sm:$0xff]  ;;  %s1195_s30 = smov [#allocation3]  }
  0x1a   :  { %v334_v22 = vld [vmem:[%s1433_s3 + $0x58] sm:$0xff]  ;;  %v1158_v23 = vld [vmem:[%s1430_s0 + $0x10] sm:$0xff]   ;;  %v335_v24 = vld [vmem:[%s1433_s3 + $0x60] sm:$0xff]  ;;  %s888_s8 = sshll.u32 %s1195_s30, 4  ;;  %s889_s8 = int_to_ptr.vmem [resolvable:$true] %s888_s8 }
  0x1b   :  { %1091 = vmatpush3.bf16.msra.mxu0 %v1154_v14  ;;  %v336_v25 = vld [vmem:[%s1433_s3 + $0x68] sm:$0xff]  ;;  %v1159_v26 = vld [vmem:[%s1430_s0 + $0x18] sm:$0xff]   ;;  %v337_v27 = vld [vmem:[%s1433_s3 + $0x70] sm:$0xff]  ;;  %s1172_s11 = scalar_lea.vmem %s889_s8, 2048  ;;  %p1177_p1 = scmp.lt.s32.totalorder %s889_s8, %s889_s8 }
  0x1c   :  { %1092 = vmatprep.subr.bf16.mxu0 %v1155_v17  ;;  %v338_v28 = vld [vmem:[%s1433_s3 + $0x78] sm:$0xff]  ;;  %v1160_v29 = vld [vmem:[%s1430_s0 + $0x20] sm:$0xff]   ;;  %v1161_v31 = vld [vmem:[%s1430_s0 + $0x28] sm:$0xff]   ;;  %p1173_p0 = scmp.ne.s32.totalorder %s889_s8, %s1172_s11  ;;  %p1178_p2 = scmp.lt.s32.totalorder %s1172_s11, %s1172_s11 }
  0x1d   :  { %455 = vperm.xlu0 %1146, %v333_v21   ;;  %460 = vperm.xlu1 %1147, %v334_v22   ;;  %v1164_v30 = vld [vmem:[%s1434_s4 + $0x38] sm:$0xff]   ;;  %v1162_v32 = vld [vmem:[%s1430_s0 + $0x30] sm:$0xff]   ;;  %v1166_v34 = vld [vmem:[%s1434_s4 + $0x28] sm:$0xff]  }
  0x1e   :  { %1110 = vmatprep.subr.bf16.mxu1 %v1164_v30  ;;  %v1165_v33 = vld [vmem:[%s1434_s4 + $0x30] sm:$0xff]   ;;  %v1163_v35 = vld [vmem:[%s1430_s0 + $0x38] sm:$0xff]   ;;  %v1167_v36 = vld [vmem:[%s1434_s4 + $0x20] sm:$0xff]   ;;  %p1179_p3 = por %p1178_p2, %p1177_p1 }
  0x1f   :  { %1093 = vmatpush3.bf16.msra.mxu0 %v1155_v17  ;;  %1111 = vmatpush3.bf16.msra.mxu1 %v1164_v30  ;;  %v1168_v37 = vld [vmem:[%s1434_s4 + $0x18] sm:$0xff]   ;;  %v1169_v38 = vld [vmem:[%s1434_s4 + $0x10] sm:$0xff]   ;;  %v1170_v39 = vld [vmem:[%s1434_s4 + $0x8] sm:$0xff]  }
  0x20   :  { %1112 = vmatprep.subr.bf16.mxu1 %v1165_v33  ;;  %v1171_v40 = vld [vmem:[%s1434_s4] sm:$0xff]   ;;  %v1032_v46 = vld [vmem:[%s1432_s2 + $0x8] sm:$0xff]   ;;  %v1033_v60 = vld [vmem:[%s1432_s2 + $0x10] sm:$0xff]   ;;  %p1180_p4 = pnand %p1179_p3, %p1173_p0 }
  0x21   :  { %465 = vperm.xlu0 %1146, %v335_v24   ;;  %470 = vperm.xlu1 %1147, %v336_v25   ;;  %v961_v45 = vld [vmem:[%s1432_s2] sm:$0xff]   ;;  %v967_v50 = vunpack.c.h.bf16 %v1032_v46  ;;  %v966_v51 = vunpack.c.l.bf16 %v1032_v46  ;;  %v1034_v63 = vld [vmem:[%s1432_s2 + $0x18] sm:$0xff]   ;;  %v970_v3 = vunpack.c.l.bf16 %v1033_v60  ;;  %v971_v11 = vunpack.c.h.bf16 %v1033_v60 }
  0x22   :  { %1095 = vmatmul.mubr.bf16.vlgmr.msra.gmra.mxu0 %v1157_v20  ;;  %v962_v49 = vunpack.c.l.bf16 %v961_v45  ;;  %v963_v54 = vunpack.c.h.bf16 %v961_v45  ;;  %v975_v4 = vunpack.c.h.bf16 %v1034_v63 }
  0x23   :  { %1098 = vmatprep.mubr.bf16.mxu0 %v1158_v23  ;;  %1113 = vmatpush3.bf16.msra.mxu1 %v1165_v33 }
  0x24   :  { %1114 = vmatprep.subr.bf16.mxu1 %v1166_v34 }
  0x25   :  { %475 = vperm.xlu0 %1146, %v337_v27   ;;  %480 = vperm.xlu1 %1147, %v338_v28  }
  0x27   :  { %1115 = vmatpush3.bf16.msra.mxu1 %v1166_v34 }
  0x28   :  { %1116 = vmatprep.subr.bf16.mxu1 %v1167_v36 }
  0x29   :  { %709 = vperm.xlu0 %1146, %v323_v7   ;;  %714 = vperm.xlu1 %1147, %v324_v9  }
  0x2a   :  { %1099 = vmatmul.mubr.bf16.gmra.mxu0 %v1159_v26 }
  0x2b   :  { %1102 = vmatprep.mubr.bf16.mxu0 %v1160_v29  ;;  %1117 = vmatpush3.bf16.msra.mxu1 %v1167_v36 }
  0x2c   :  { %1118 = vmatprep.subr.bf16.mxu1 %v1168_v37 }
  0x2d   :  { %719 = vperm.xlu0 %1146, %v325_v8   ;;  %724 = vperm.xlu1 %1147, %v326_v10   ;;  %v974_v8 = vunpack.c.l.bf16 %v1034_v63 }
  0x2f   :  { %1119 = vmatpush3.bf16.msra.mxu1 %v1168_v37 }
  0x30   :  { %1120 = vmatprep.subr.bf16.mxu1 %v1169_v38 }
  0x31   :  { %729 = vperm.xlu0 %1146, %v327_v12   ;;  %734 = vperm.xlu1 %1147, %v328_v13  }
  0x32   :  { %1103 = vmatmul.mubr.bf16.gmra.mxu0 %v1161_v31 }
  0x33   :  { %1106 = vmatprep.mubr.bf16.mxu0 %v1162_v32  ;;  %1121 = vmatpush3.bf16.msra.mxu1 %v1169_v38 }
  0x34   :  { %1122 = vmatprep.subr.bf16.mxu1 %v1170_v39 }
  0x35   :  { %739 = vperm.xlu0 %1146, %v329_v15   ;;  %744 = vperm.xlu1 %1147, %v330_v16  }
  0x37   :  { %1123 = vmatpush3.bf16.msra.mxu1 %v1170_v39 }
  0x38   :  { %1124 = vmatprep.subr.bf16.mxu1 %v1171_v40 }
  0x39   :  { %749 = vperm.xlu0 %1146, %v331_v18   ;;  %754 = vperm.xlu1 %1147, %v332_v19   ;;  %v1035_v19 = vld [vmem:[%s1432_s2 + $0x20] sm:$0xff]  }
  0x3a   :  { %1107 = vmatmul.mubr.bf16.gmra.mxu0 %v1163_v35  ;;  %v979_v34 = vunpack.c.h.bf16 %v1035_v19 }
  0x3b   :  { %1125 = vmatpush3.bf16.msra.mxu1 %v1171_v40 }
  0x3d   :  { %759 = vperm.xlu0 %1146, %v333_v21   ;;  %764 = vperm.xlu1 %1147, %v334_v22   ;;  %v1036_v22 = vld [vmem:[%s1432_s2 + $0x28] sm:$0xff]  }
  0x3e   :  { %v982_v30 = vunpack.c.l.bf16 %v1036_v22 }
  0x41   :  { %769 = vperm.xlu0 %1146, %v335_v24   ;;  %774 = vperm.xlu1 %1147, %v336_v25  }
  0x45   :  { %779 = vperm.xlu0 %1146, %v337_v27   ;;  %784 = vperm.xlu1 %1147, %v338_v28   ;;  %v978_v27 = vunpack.c.l.bf16 %v1035_v19  ;;  %v983_v28 = vunpack.c.h.bf16 %v1036_v22 }
  0x7e   :  { %v416_v41 = vpop.permute.xlu1 %415 }
  0x80   :  { %v406_v42 = vpop.permute.xlu0 %405 }
  0x82   :  { %v421_v43 = vpop.permute.xlu1 %420 }
  0x84   :  { %v411_v44 = vpop.permute.xlu0 %410 }
  0x86   :  { %v431_v48 = vpop.permute.xlu1 %430 }
  0x88   :  { %v426_v53 = vpop.permute.xlu0 %425 }
  0x8a   :  { %v441_v61 = vpop.permute.xlu1 %440 }
  0x8c   :  { %v436_v2 = vpop.permute.xlu0 %435 }
  0x94   :  { %v451_v14 = vpop.permute.xlu1 %450  ;;  %v446_v20 = vpop.permute.xlu0 %445 }
  0x98   :  { %v461_v32 = vpop.permute.xlu1 %460  ;;  %v456_v37 = vpop.permute.xlu0 %455 }
  0xe2   :  { %v1096_v47 = vpop.f32.mrf.mxu0 }
  0xe3   :  { %v389_v58 = vadd.f32 %v1096_v47, %v966_v51  ;;  %v471_v47 = vpop.permute.xlu1 %470 }
  0xe4   :  { %v225_v52 = vpop.f32.mrf.mxu0 }
  0xe5   :  { %v387_v56 = vadd.f32 %v962_v49, %v225_v52  ;;  %v485_v7 = vmul.f32 %v416_v41, %v389_v58 }
  0xe6   :  { %v1097_v55 = vpop.f32.mrf.mxu0 }
  0xe7   :  { %v390_v57 = vadd.f32 %v1097_v55, %v967_v50  ;;  %v483_v5 = vmul.f32 %v406_v42, %v387_v56  ;;  %v1037_v42 = vld [vmem:[%s1432_s2 + $0x30] sm:$0xff]   ;;  %v466_v55 = vpop.permute.xlu0 %465 }
  0xe8   :  { %v228_v59 = vpop.f32.mrf.mxu0  ;;  %v986_v50 = vunpack.c.l.bf16 %v1037_v42 }
  0xe9   :  { %v388_v62 = vadd.f32 %v963_v54, %v228_v59  ;;  %v486_v0 = vmul.f32 %v421_v43, %v390_v57  ;;  %v987_v57 = vunpack.c.h.bf16 %v1037_v42 }
  0xea   :  { %v1100_v1 = vpop.f32.mrf.mxu0 }
  0xeb   :  { %v484_v6 = vmul.f32 %v411_v44, %v388_v62  ;;  %v500_v13 = vpack.c.bf16 %v486_v0, %v485_v7  ;;  %v393_v17 = vadd.f32 %v1100_v1, %v974_v8  ;;  %v1038_v44 = vld [vmem:[%s1432_s2 + $0x38] sm:$0xff]   ;;  %v481_v0 = vpop.permute.xlu1 %480 }
  0xec   :  { %v241_v9 = vpop.f32.mrf.mxu0  ;;  %v991_v51 = vunpack.c.h.bf16 %v1038_v44 }
  0xed   :  { %v499_v10 = vpack.c.bf16 %v484_v6, %v483_v5  ;;  %v391_v15 = vadd.f32 %v970_v3, %v241_v9  ;;  %v489_v29 = vmul.f32 %v436_v2, %v393_v17  ;;  %v476_v3 = vpop.permute.xlu0 %475 }
  0xee   :  { %v1101_v12 = vpop.f32.mrf.mxu0 }
  0xef   :  { %v394_v16 = vadd.f32 %v1101_v12, %v975_v4  ;;  %1126 = vmatprep.mubr.bf16.mxu1 %v499_v10  ;;  %v487_v25 = vmul.f32 %v426_v53, %v391_v15  ;;  %v990_v53 = vunpack.c.l.bf16 %v1038_v44  ;;  %v715_v10 = vpop.permute.xlu1 %714 }
  0xf0   :  { %v244_v18 = vpop.f32.mrf.mxu0  ;;  %1127 = vmatmul.mubr.bf16.vlgmr.msra.gmra.mxu1 %v500_v13  ;;  %v1385_v13 = vld [vmem:[%s1435_s5] ss:$0 sm:$0xff] }
  0xf1   :  { %v392_v21 = vadd.f32 %v971_v11, %v244_v18  ;;  %v490_v23 = vmul.f32 %v441_v61, %v394_v16  ;;  %v710_v9 = vpop.permute.xlu0 %709 }
  0xf2   :  { %v1104_v24 = vpop.f32.mrf.mxu0 }
  0xf3   :  { %v488_v26 = vmul.f32 %v431_v48, %v392_v21  ;;  %v502_v36 = vpack.c.bf16 %v490_v23, %v489_v29  ;;  %v397_v40 = vadd.f32 %v1104_v24, %v982_v30  ;;  %v725_v12 = vpop.permute.xlu1 %724 }
  0xf4   :  { %v257_v31 = vpop.f32.mrf.mxu0 }
  0xf5   :  { %v501_v33 = vpack.c.bf16 %v488_v26, %v487_v25  ;;  %v395_v38 = vadd.f32 %v978_v27, %v257_v31  ;;  %v493_v52 = vmul.f32 %v456_v37, %v397_v40  ;;  %v720_v11 = vpop.permute.xlu0 %719 }
  0xf6   :  { %v1105_v35 = vpop.f32.mrf.mxu0 }
  0xf7   :  { %v398_v39 = vadd.f32 %v1105_v35, %v983_v28  ;;  %1130 = vmatprep.mubr.bf16.mxu1 %v501_v33  ;;  %v491_v48 = vmul.f32 %v446_v20, %v395_v38  ;;  %v735_v15 = vpop.permute.xlu1 %734 }
  0xf8   :  { %v260_v41 = vpop.f32.mrf.mxu0  ;;  %1131 = vmatmul.mubr.bf16.gmra.mxu1 %v502_v36 }
  0xf9   :  { %v396_v43 = vadd.f32 %v979_v34, %v260_v41  ;;  %v494_v45 = vmul.f32 %v461_v32, %v398_v39 }
  0xfa   :  { %v1108_v46 = vpop.f32.mrf.mxu0 }
  0xfb   :  { %v492_v49 = vmul.f32 %v451_v14, %v396_v43  ;;  %v504_v59 = vpack.c.bf16 %v494_v45, %v493_v52  ;;  %v401_v62 = vadd.f32 %v1108_v46, %v990_v53  ;;  %v730_v14 = vpop.permute.xlu0 %729  ;;  %v745_v23 = vpop.permute.xlu1 %744 }
  0xfc   :  { %v273_v54 = vpop.f32.mrf.mxu0 }
  0xfd   :  { %v503_v56 = vpack.c.bf16 %v492_v49, %v491_v48  ;;  %v399_v60 = vadd.f32 %v986_v50, %v273_v54  ;;  %v497_v6 = vmul.f32 %v476_v3, %v401_v62 }
  0xfe   :  { %v1109_v58 = vpop.f32.mrf.mxu0 }
  0xff   :  { %v402_v61 = vadd.f32 %v1109_v58, %v991_v51  ;;  %1134 = vmatprep.mubr.bf16.mxu1 %v503_v56  ;;  %v495_v4 = vmul.f32 %v466_v55, %v399_v60  ;;  %v740_v21 = vpop.permute.xlu0 %739  ;;  %v755_v37 = vpop.permute.xlu1 %754 }
 0x100   :  { %v276_v63 = vpop.f32.mrf.mxu0  ;;  %1135 = vmatmul.mubr.bf16.gmra.mxu1 %v504_v59 }
 0x101   :  { %v400_v1 = vadd.f32 %v987_v57, %v276_v63  ;;  %v498_v2 = vmul.f32 %v481_v0, %v402_v61 }
 0x103   :  { %v496_v5 = vmul.f32 %v471_v47, %v400_v1  ;;  %v506_v8 = vpack.c.bf16 %v498_v2, %v497_v6  ;;  %v750_v34 = vpop.permute.xlu0 %749  ;;  %v765_v50 = vpop.permute.xlu1 %764 }
 0x105   :  { %v505_v7 = vpack.c.bf16 %v496_v5, %v495_v4 }
 0x107   :  { %1138 = vmatprep.mubr.bf16.mxu1 %v505_v7  ;;  %v760_v45 = vpop.permute.xlu0 %759  ;;  %v775_v61 = vpop.permute.xlu1 %774 }
 0x108   :  { %1139 = vmatmul.mubr.bf16.gmra.mxu1 %v506_v8 }
 0x10b   :  { %v770_v57 = vpop.permute.xlu0 %769 }
 0x10f   :  { %v780_v7 = vpop.permute.xlu0 %779 }
 0x1b0   :  { %v1128_v16 = vpop.f32.mrf.mxu1 }
 0x1b1   :  { %v621_v17 = vadd.f32 %v1128_v16, %v1385_v13 }
 0x1b2   :  { %v612_v18 = vpop.f32.mrf.mxu1 }
 0x1b3   :  { %677 = vst [vmem:[#allocation3 + $0x10] sm:$0xff] %v621_v17  ;;  %v613_v19 = vadd.f32 %v1385_v13, %v612_v18  ;;  %v789_v25 = vmul.f32 %v720_v11, %v621_v17 }
 0x1b4   :  { %v1129_v20 = vpop.f32.mrf.mxu1 }
 0x1b5   :  { %675 = vst [vmem:[#allocation3] sm:$0xff] %v613_v19  ;;  %v624_v22 = vadd.f32 %v1129_v20, %v1385_v13  ;;  %v787_v29 = vmul.f32 %v710_v9, %v613_v19  ;;  %v785_v9 = vpop.permute.xlu1 %784 }
 0x1b6   :  { %v615_v24 = vpop.f32.mrf.mxu1 }
 0x1b7   :  { %678 = vst [vmem:[#allocation3 + $0x18] sm:$0xff] %v624_v22  ;;  %v790_v26 = vmul.f32 %v725_v12, %v624_v22  ;;  %v616_v27 = vadd.f32 %v1385_v13, %v615_v24 }
 0x1b8   :  { %v1132_v28 = vpop.f32.mrf.mxu1 }
 0x1b9   :  { %v1000_v30 = vpack.c.bf16 %v790_v26, %v789_v25  ;;  %676 = vst [vmem:[#allocation3 + $0x8] sm:$0xff] %v616_v27  ;;  %v788_v31 = vmul.f32 %v715_v10, %v616_v27  ;;  %v637_v32 = vadd.f32 %v1132_v28, %v1385_v13 }
 0x1ba   :  { %v628_v33 = vpop.f32.mrf.mxu1 }
 0x1bb   :  { %1039 = vst [vmem:[%s1437_s7 + $0x8] sm:$0xff] %v1000_v30   ;;  %v995_v35 = vpack.c.bf16 %v788_v31, %v787_v29  ;;  %681 = vst [vmem:[#allocation3 + $0x30] sm:$0xff] %v637_v32  ;;  %v629_v36 = vadd.f32 %v1385_v13, %v628_v33  ;;  %v793_v41 = vmul.f32 %v740_v21, %v637_v32 }
 0x1bc   :  { %v1133_v38 = vpop.f32.mrf.mxu1 }
 0x1bd   :  { %996 = vst [vmem:[%s1437_s7] sm:$0xff] %v995_v35   ;;  %679 = vst [vmem:[#allocation3 + $0x20] sm:$0xff] %v629_v36  ;;  %v640_v39 = vadd.f32 %v1133_v38, %v1385_v13  ;;  %v791_v46 = vmul.f32 %v730_v14, %v629_v36 }
 0x1be   :  { %v631_v40 = vpop.f32.mrf.mxu1 }
 0x1bf   :  { %682 = vst [vmem:[#allocation3 + $0x38] sm:$0xff] %v640_v39  ;;  %v794_v42 = vmul.f32 %v745_v23, %v640_v39  ;;  %v632_v43 = vadd.f32 %v1385_v13, %v631_v40 }
 0x1c0   :  { %v1136_v44 = vpop.f32.mrf.mxu1 }
 0x1c1   :  { %v1010_v47 = vpack.c.bf16 %v794_v42, %v793_v41  ;;  %680 = vst [vmem:[#allocation3 + $0x28] sm:$0xff] %v632_v43  ;;  %v792_v48 = vmul.f32 %v735_v15, %v632_v43  ;;  %v653_v49 = vadd.f32 %v1136_v44, %v1385_v13 }
 0x1c2   :  { %v644_v51 = vpop.f32.mrf.mxu1 }
 0x1c3   :  { %1041 = vst [vmem:[%s1437_s7 + $0x18] sm:$0xff] %v1010_v47   ;;  %v1005_v52 = vpack.c.bf16 %v792_v48, %v791_v46  ;;  %685 = vst [vmem:[#allocation3 + $0x50] sm:$0xff] %v653_v49  ;;  %v645_v53 = vadd.f32 %v1385_v13, %v644_v51  ;;  %v797_v58 = vmul.f32 %v760_v45, %v653_v49 }
 0x1c4   :  { %v1137_v54 = vpop.f32.mrf.mxu1 }
 0x1c5   :  { %1040 = vst [vmem:[%s1437_s7 + $0x10] sm:$0xff] %v1005_v52   ;;  %683 = vst [vmem:[#allocation3 + $0x40] sm:$0xff] %v645_v53  ;;  %v656_v55 = vadd.f32 %v1137_v54, %v1385_v13  ;;  %v795_v63 = vmul.f32 %v750_v34, %v645_v53 }
 0x1c6   :  { %v647_v56 = vpop.f32.mrf.mxu1 }
 0x1c7   :  { %686 = vst [vmem:[#allocation3 + $0x58] sm:$0xff] %v656_v55  ;;  %v798_v59 = vmul.f32 %v765_v50, %v656_v55  ;;  %v648_v60 = vadd.f32 %v1385_v13, %v647_v56 }
 0x1c8   :  { %v1140_v62 = vpop.f32.mrf.mxu1 }
 0x1c9   :  { %v1020_v0 = vpack.c.bf16 %v798_v59, %v797_v58  ;;  %684 = vst [vmem:[#allocation3 + $0x48] sm:$0xff] %v648_v60  ;;  %v796_v1 = vmul.f32 %v755_v37, %v648_v60  ;;  %v669_v2 = vadd.f32 %v1140_v62, %v1385_v13 }
 0x1ca   :  { %v660_v3 = vpop.f32.mrf.mxu1 }
 0x1cb   :  { %1043 = vst [vmem:[%s1437_s7 + $0x28] sm:$0xff] %v1020_v0   ;;  %v1015_v4 = vpack.c.bf16 %v796_v1, %v795_v63  ;;  %689 = vst [vmem:[#allocation3 + $0x70] sm:$0xff] %v669_v2  ;;  %v661_v5 = vadd.f32 %v1385_v13, %v660_v3  ;;  %v801_v11 = vmul.f32 %v780_v7, %v669_v2 }
 0x1cc   :  { %v1141_v6 = vpop.f32.mrf.mxu1 }
 0x1cd   :  { %1042 = vst [vmem:[%s1437_s7 + $0x20] sm:$0xff] %v1015_v4   ;;  %687 = vst [vmem:[#allocation3 + $0x60] sm:$0xff] %v661_v5  ;;  %v672_v8 = vadd.f32 %v1141_v6, %v1385_v13  ;;  %v799_v15 = vmul.f32 %v770_v57, %v661_v5 }
 0x1ce   :  { %v663_v10 = vpop.f32.mrf.mxu1 }
 0x1cf   :  { %690 = vst [vmem:[#allocation3 + $0x78] sm:$0xff] %v672_v8  ;;  %v802_v12 = vmul.f32 %v785_v9, %v672_v8  ;;  %v664_v14 = vadd.f32 %v1385_v13, %v663_v10 }
 0x1d1   :  { %v1030_v16 = vpack.c.bf16 %v802_v12, %v801_v11  ;;  %688 = vst [vmem:[#allocation3 + $0x68] sm:$0xff] %v664_v14  ;;  %v800_v17 = vmul.f32 %v775_v61, %v664_v14 }
 0x1d2   :  { %1183 = shalt.err (!%p1180_p4)
}
 0x1d3   :  { %s1196_s4 = smov 128   ;;  %s1197_s12 = smov 8   ;;  %1045 = vst [vmem:[%s1437_s7 + $0x38] sm:$0xff] %v1030_v16   ;;  %v1025_v13 = vpack.c.bf16 %v800_v17, %v799_v15 }
 0x1d4   :  { %894 = dma.vmem_to_hbm [thread:$0]  %s889_s8, 2048, %s1436_s6, [#allocation4], %s1196_s4, %s1196_s4, %s1197_s12  }
 0x1d5   :  { %1044 = vst [vmem:[%s1437_s7 + $0x30] sm:$0xff] %v1025_v13  }
 0x1d6   :  { %1192 = dma.done.wait [#allocation4], 2048  }
 0x1d7   :  { %1193 = vsyncadd [#allocation4], 4294965248 }
 0x1d8   :  { %902 = vsyncpa [#allocation4], 1 }

// kernel: dominant_forward.5
= control target key start
LH: loop header
LB: loop body
LE: loop exit
PB: predicated region body
PF: predicated region fallthrough
CT: control target
= control target key end

     0   :  { %v1263_v1 = vmov 0   ;;  %s1633_s1 = inlined_call_operand.vmem [shape: bf16[128,128], index: 1, kind: input, shape index: {}, may-alias: {1,2}]   ;;  %s1634_s0 = inlined_call_operand.vmem [shape: bf16[128,128], index: 0, kind: input, shape index: {}]   ;;  %s1635_s3 = inlined_call_operand.vmem [shape: f32[128,1], index: 3, kind: input, shape index: {}]   ;;  %s1636_s4 = inlined_call_operand.vmem [shape: bf16[128,256], index: 4, kind: input, shape index: {}]   ;;  %s1637_s2 = inlined_call_operand.vmem [shape: bf16[128,128], index: 2, kind: input, shape index: {}, may-alias: {1,2}]   ;;  %s1638_s5 = inlined_call_operand.vmem [shape: f32[1,256], index: 5, kind: input, shape index: {}]   ;;  %s1639_s7 = inlined_call_operand.vmem [shape: bf16[128,128], index: 7, kind: output, shape index: {1}]   ;;  %s1640_s6 = inlined_call_operand.vmem [shape: bf16[128,128], index: 6, kind: output, shape index: {0}]  }
   0x1   :  { %v1223_v0 = vld [vmem:[%s1633_s1 + $0x38] sm:$0xff]   ;;  %1221 = vset.pattern.permute.xlu0 %v1263_v1  ;;  %1222 = vset.pattern.permute.xlu1 %v1263_v1  ;;  %v1224_v2 = vld [vmem:[%s1633_s1 + $0x30] sm:$0xff]   ;;  %v1225_v3 = vld [vmem:[%s1633_s1 + $0x28] sm:$0xff]  }
   0x2   :  { %666 = vmatprep.mubr.bf16.mxu1 %v1263_v1  ;;  %1172 = vmatprep.subr.bf16.mxu0 %v1223_v0  ;;  %v1226_v4 = vld [vmem:[%s1633_s1 + $0x20] sm:$0xff]   ;;  %v1227_v6 = vld [vmem:[%s1633_s1 + $0x18] sm:$0xff]   ;;  %v1228_v7 = vld [vmem:[%s1633_s1 + $0x10] sm:$0xff]  }
   0x3   :  { %1173 = vmatpush3.bf16.msra.mxu0 %v1223_v0  ;;  %v1231_v5 = vld [vmem:[%s1634_s0] sm:$0xff]   ;;  %v328_v9 = vld [vmem:[%s1635_s3 + $0x30] sm:$0xff]  ;;  %v327_v10 = vld [vmem:[%s1635_s3 + $0x28] sm:$0xff] }
   0x4   :  { %1174 = vmatprep.subr.bf16.mxu0 %v1224_v2  ;;  %1188 = vmatprep.mubr.bf16.mxu0 %v1231_v5  ;;  %v326_v8 = vld [vmem:[%s1635_s3 + $0x20] sm:$0xff]  ;;  %v329_v11 = vld [vmem:[%s1635_s3 + $0x38] sm:$0xff]  ;;  %v1229_v12 = vld [vmem:[%s1633_s1 + $0x8] sm:$0xff]  }
   0x5   :  { %424 = vperm.xlu0 %1221, %v326_v8   ;;  %434 = vperm.xlu1 %1222, %v328_v9   ;;  %v330_v13 = vld [vmem:[%s1635_s3 + $0x40] sm:$0xff]  ;;  %v331_v14 = vld [vmem:[%s1635_s3 + $0x48] sm:$0xff]  ;;  %v1241_v15 = vld [vmem:[%s1636_s4 + $0x74] ss:$8 sps:$4 sm:$0xff]  }
   0x6   :  { %v1230_v16 = vld [vmem:[%s1633_s1] sm:$0xff]   ;;  %v1239_v17 = vld [vmem:[%s1636_s4 + $0x70] ss:$8 sps:$4 sm:$0xff]   ;;  %1204 = vmatprep.subr.bf16.mxu1 %v1241_v15  ;;  %v1247_v22 = vld [vmem:[%s1636_s4 + $0x54] ss:$8 sps:$4 sm:$0xff]  }
   0x7   :  { %1175 = vmatpush3.bf16.msra.mxu0 %v1224_v2  ;;  %v1244_v18 = vld [vmem:[%s1636_s4 + $0x64] ss:$8 sps:$4 sm:$0xff]   ;;  %v332_v19 = vld [vmem:[%s1635_s3 + $0x50] sm:$0xff]  ;;  %v333_v20 = vld [vmem:[%s1635_s3 + $0x58] sm:$0xff]  ;;  %1212 = vmatpush1.bf16.msra.mxu1 %v1239_v17 }
   0x8   :  { %1176 = vmatprep.subr.bf16.mxu0 %v1225_v3  ;;  %1205 = vmatprep.subr.bf16.mxu1 %v1244_v18  ;;  %v1242_v21 = vld [vmem:[%s1636_s4 + $0x60] ss:$8 sps:$4 sm:$0xff]   ;;  %v1233_v26 = vld [vmem:[%s1634_s0 + $0x10] sm:$0xff]   ;;  %v1250_v30 = vld [vmem:[%s1636_s4 + $0x44] ss:$8 sps:$4 sm:$0xff]  }
   0x9   :  { %429 = vperm.xlu0 %1221, %v327_v10   ;;  %439 = vperm.xlu1 %1222, %v329_v11   ;;  %v1232_v23 = vld [vmem:[%s1634_s0 + $0x8] sm:$0xff]   ;;  %v322_v24 = vld [vmem:[%s1635_s3] sm:$0xff]  ;;  %v1245_v27 = vld [vmem:[%s1636_s4 + $0x50] ss:$8 sps:$4 sm:$0xff]  }
   0xa   :  { %v323_v25 = vld [vmem:[%s1635_s3 + $0x8] sm:$0xff]  ;;  %v334_v28 = vld [vmem:[%s1635_s3 + $0x60] sm:$0xff]  ;;  %v1253_v32 = vld [vmem:[%s1636_s4 + $0x34] ss:$8 sps:$4 sm:$0xff]  }
   0xb   :  { %1177 = vmatpush3.bf16.msra.mxu0 %v1225_v3  ;;  %1213 = vmatpush1.bf16.msra.mxu1 %v1242_v21  ;;  %v335_v29 = vld [vmem:[%s1635_s3 + $0x68] sm:$0xff]  ;;  %v1234_v33 = vld [vmem:[%s1634_s0 + $0x18] sm:$0xff]   ;;  %v324_v34 = vld [vmem:[%s1635_s3 + $0x10] sm:$0xff] }
   0xc   :  { %1178 = vmatprep.subr.bf16.mxu0 %v1226_v4  ;;  %1206 = vmatprep.subr.bf16.mxu1 %v1247_v22  ;;  %v1248_v31 = vld [vmem:[%s1636_s4 + $0x40] ss:$8 sps:$4 sm:$0xff]   ;;  %v325_v35 = vld [vmem:[%s1635_s3 + $0x18] sm:$0xff]  ;;  %v336_v38 = vld [vmem:[%s1635_s3 + $0x70] sm:$0xff] }
   0xd   :  { %444 = vperm.xlu0 %1221, %v330_v13   ;;  %449 = vperm.xlu1 %1222, %v331_v14   ;;  %v1235_v36 = vld [vmem:[%s1634_s0 + $0x20] sm:$0xff]   ;;  %v1251_v37 = vld [vmem:[%s1636_s4 + $0x30] ss:$8 sps:$4 sm:$0xff]   ;;  %v1236_v40 = vld [vmem:[%s1634_s0 + $0x28] sm:$0xff]  }
   0xe   :  { %v337_v39 = vld [vmem:[%s1635_s3 + $0x78] sm:$0xff]  ;;  %v1237_v41 = vld [vmem:[%s1634_s0 + $0x30] sm:$0xff]   ;;  %v1256_v43 = vld [vmem:[%s1636_s4 + $0x24] ss:$8 sps:$4 sm:$0xff]  }
   0xf   :  { %1179 = vmatpush3.bf16.msra.mxu0 %v1226_v4  ;;  %1214 = vmatpush1.bf16.msra.mxu1 %v1245_v27  ;;  %v1238_v42 = vld [vmem:[%s1634_s0 + $0x38] sm:$0xff]   ;;  %v1254_v44 = vld [vmem:[%s1636_s4 + $0x20] ss:$8 sps:$4 sm:$0xff]   ;;  %v1262_v47 = vld [vmem:[%s1636_s4 + $0x4] ss:$8 sps:$4 sm:$0xff]  }
  0x10   :  { %1180 = vmatprep.subr.bf16.mxu0 %v1227_v6  ;;  %1207 = vmatprep.subr.bf16.mxu1 %v1250_v30  ;;  %v1259_v45 = vld [vmem:[%s1636_s4 + $0x14] ss:$8 sps:$4 sm:$0xff]   ;;  %v1257_v46 = vld [vmem:[%s1636_s4 + $0x10] ss:$8 sps:$4 sm:$0xff]   ;;  %v1260_v48 = vld [vmem:[%s1636_s4] ss:$8 sps:$4 sm:$0xff]  }
  0x11   :  { %454 = vperm.xlu0 %1221, %v332_v19   ;;  %459 = vperm.xlu1 %1222, %v333_v20   ;;  %v1024_v57 = vld [vmem:[%s1637_s2] sm:$0xff]   ;;  %v1135_v3 = vld [vmem:[%s1637_s2 + $0x8] sm:$0xff]  }
  0x12   :  { %v1025_v60 = vunpack.c.l.bf16 %v1024_v57  ;;  %v1026_v63 = vunpack.c.h.bf16 %v1024_v57  ;;  %v1029_v11 = vunpack.c.l.bf16 %v1135_v3 }
  0x13   :  { %1181 = vmatpush3.bf16.msra.mxu0 %v1227_v6  ;;  %1215 = vmatpush1.bf16.msra.mxu1 %v1248_v31  ;;  %v1136_v6 = vld [vmem:[%s1637_s2 + $0x10] sm:$0xff]  }
  0x14   :  { %1182 = vmatprep.subr.bf16.mxu0 %v1228_v7  ;;  %1208 = vmatprep.subr.bf16.mxu1 %v1253_v32  ;;  %v1033_v14 = vunpack.c.l.bf16 %v1136_v6 }
  0x15   :  { %404 = vperm.xlu0 %1221, %v322_v24   ;;  %409 = vperm.xlu1 %1222, %v323_v25   ;;  %v1137_v24 = vld [vmem:[%s1637_s2 + $0x18] sm:$0xff]  }
  0x17   :  { %1183 = vmatpush3.bf16.msra.mxu0 %v1228_v7  ;;  %1216 = vmatpush1.bf16.msra.mxu1 %v1251_v37  ;;  %v1030_v7 = vunpack.c.h.bf16 %v1135_v3 }
  0x18   :  { %1184 = vmatprep.subr.bf16.mxu0 %v1229_v12  ;;  %1209 = vmatprep.subr.bf16.mxu1 %v1256_v43 }
  0x19   :  { %464 = vperm.xlu0 %1221, %v334_v28   ;;  %469 = vperm.xlu1 %1222, %v335_v29  }
  0x1b   :  { %1185 = vmatpush3.bf16.msra.mxu0 %v1229_v12  ;;  %1217 = vmatpush1.bf16.msra.mxu1 %v1254_v44 }
  0x1c   :  { %1186 = vmatprep.subr.bf16.mxu0 %v1230_v16  ;;  %1210 = vmatprep.subr.bf16.mxu1 %v1259_v45 }
  0x1d   :  { %414 = vperm.xlu0 %1221, %v324_v34   ;;  %419 = vperm.xlu1 %1222, %v325_v35  }
  0x1f   :  { %1187 = vmatpush3.bf16.msra.mxu0 %v1230_v16  ;;  %1218 = vmatpush1.bf16.msra.mxu1 %v1257_v46 }
  0x20   :  { %614 = vmatprep.subr.bf16.mxu0 %v1241_v15  ;;  %1211 = vmatprep.subr.bf16.mxu1 %v1262_v47 }
  0x21   :  { %474 = vperm.xlu0 %1221, %v336_v38   ;;  %479 = vperm.xlu1 %1222, %v337_v39  }
  0x22   :  { %1189 = vmatmul.mubr.bf16.vlgmr.msra.gmra.mxu0 %v1232_v23 }
  0x23   :  { %1192 = vmatprep.mubr.bf16.mxu0 %v1233_v26  ;;  %615 = vmatpush1.bf16.msra.mxu0 %v1239_v17 }
  0x24   :  { %616 = vmatprep.subr.bf16.mxu0 %v1244_v18  ;;  %1219 = vmatpush1.bf16.msra.mxu1 %v1260_v48  ;;  %v1034_v18 = vunpack.c.h.bf16 %v1136_v6 }
  0x27   :  { %617 = vmatpush1.bf16.msra.mxu0 %v1242_v21 }
  0x28   :  { %618 = vmatprep.subr.bf16.mxu0 %v1247_v22 }
  0x2a   :  { %1193 = vmatmul.mubr.bf16.gmra.mxu0 %v1234_v33 }
  0x2b   :  { %1196 = vmatprep.mubr.bf16.mxu0 %v1235_v36  ;;  %619 = vmatpush1.bf16.msra.mxu0 %v1245_v27  ;;  %v1038_v27 = vunpack.c.h.bf16 %v1137_v24 }
  0x2c   :  { %620 = vmatprep.subr.bf16.mxu0 %v1250_v30 }
  0x2f   :  { %621 = vmatpush1.bf16.msra.mxu0 %v1248_v31  ;;  %v1037_v31 = vunpack.c.l.bf16 %v1137_v24 }
  0x30   :  { %622 = vmatprep.subr.bf16.mxu0 %v1253_v32 }
  0x32   :  { %1197 = vmatmul.mubr.bf16.gmra.mxu0 %v1236_v40  ;;  %v1138_v40 = vld [vmem:[%s1637_s2 + $0x20] sm:$0xff]  }
  0x33   :  { %1200 = vmatprep.mubr.bf16.mxu0 %v1237_v41  ;;  %623 = vmatpush1.bf16.msra.mxu0 %v1251_v37 }
  0x34   :  { %624 = vmatprep.subr.bf16.mxu0 %v1256_v43 }
  0x37   :  { %625 = vmatpush1.bf16.msra.mxu0 %v1254_v44 }
  0x38   :  { %626 = vmatprep.subr.bf16.mxu0 %v1259_v45  ;;  %v1041_v45 = vunpack.c.l.bf16 %v1138_v40 }
  0x3a   :  { %1201 = vmatmul.mubr.bf16.gmra.mxu0 %v1238_v42  ;;  %v1042_v42 = vunpack.c.h.bf16 %v1138_v40 }
  0x3b   :  { %646 = vmatprep.mubr.bf16.mxu0 %v1263_v1  ;;  %627 = vmatpush1.bf16.msra.mxu0 %v1257_v46 }
  0x3c   :  { %628 = vmatprep.subr.bf16.mxu0 %v1262_v47 }
  0x3f   :  { %629 = vmatpush1.bf16.msra.mxu0 %v1260_v48 }
  0x80   :  { %v1452_v49 = vpop.permute.xlu1 %434  ;;  %v1454_v50 = vpop.permute.xlu0 %424 }
  0x84   :  { %v1456_v51 = vpop.permute.xlu1 %439  ;;  %v1458_v52 = vpop.permute.xlu0 %429 }
  0x88   :  { %v1460_v53 = vpop.permute.xlu1 %449  ;;  %v1462_v54 = vpop.permute.xlu0 %444 }
  0x8c   :  { %v1464_v55 = vpop.permute.xlu1 %459  ;;  %v1466_v56 = vpop.permute.xlu0 %454 }
  0x90   :  { %v1471_v58 = vpop.permute.xlu1 %409  ;;  %v1473_v61 = vpop.permute.xlu0 %404 }
  0x94   :  { %v1478_v4 = vpop.permute.xlu1 %469  ;;  %v1483_v9 = vpop.permute.xlu0 %464 }
  0x98   :  { %v1487_v19 = vpop.permute.xlu1 %419  ;;  %v1489_v23 = vpop.permute.xlu0 %414 }
  0xe2   :  { %v1190_v59 = vpop.f32.mrf.mxu0 }
  0xe3   :  { %v388_v21 = vadd.f32 %v1190_v59, %v1029_v11  ;;  %v1139_v59 = vld [vmem:[%s1637_s2 + $0x28] sm:$0xff]  }
  0xe4   :  { %v224_v62 = vpop.f32.mrf.mxu0 }
  0xe5   :  { %v386_v2 = vadd.f32 %v1025_v60, %v224_v62  ;;  %v484_v30 = vmul.f32 %v1489_v23, %v388_v21  ;;  %v1046_v60 = vunpack.c.h.bf16 %v1139_v59 }
  0xe6   :  { %v1191_v0 = vpop.f32.mrf.mxu0 }
  0xe7   :  { %v482_v12 = vmul.f32 %v1473_v61, %v386_v2  ;;  %v389_v16 = vadd.f32 %v1191_v0, %v1030_v7  ;;  %v1045_v0 = vunpack.c.l.bf16 %v1139_v59 }
  0xe8   :  { %v227_v5 = vpop.f32.mrf.mxu0 }
  0xe9   :  { %v387_v8 = vadd.f32 %v1026_v63, %v227_v5  ;;  %v485_v26 = vmul.f32 %v1487_v19, %v389_v16 }
  0xea   :  { %v1194_v10 = vpop.f32.mrf.mxu0 }
  0xeb   :  { %v483_v13 = vmul.f32 %v1471_v58, %v387_v8  ;;  %v499_v35 = vpack.c.bf16 %v485_v26, %v484_v30  ;;  %v392_v39 = vadd.f32 %v1194_v10, %v1037_v31  ;;  %v1140_v8 = vld [vmem:[%s1637_s2 + $0x30] sm:$0xff]   ;;  %v1527_v30 = vpop.permute.xlu0 %474 }
  0xec   :  { %v240_v15 = vpop.f32.mrf.mxu0  ;;  %v1050_v11 = vunpack.c.h.bf16 %v1140_v8 }
  0xed   :  { %v498_v17 = vpack.c.bf16 %v483_v13, %v482_v12  ;;  %v390_v22 = vadd.f32 %v1033_v14, %v240_v15  ;;  %v488_v44 = vmul.f32 %v1452_v49, %v392_v39  ;;  %v1049_v14 = vunpack.c.l.bf16 %v1140_v8 }
  0xee   :  { %v1195_v20 = vpop.f32.mrf.mxu0 }
  0xef   :  { %647 = vmatmul.mubr.bf16.vlgmr.msra.gmra.mxu0 %v498_v17  ;;  %v486_v32 = vmul.f32 %v1454_v50, %v390_v22  ;;  %v393_v36 = vadd.f32 %v1195_v20, %v1038_v27 }
  0xf0   :  { %v243_v25 = vpop.f32.mrf.mxu0  ;;  %656 = vmatprep.mubr.bf16.mxu0 %v1263_v1 }
  0xf1   :  { %v391_v28 = vadd.f32 %v1034_v18, %v243_v25  ;;  %v489_v41 = vmul.f32 %v1456_v51, %v393_v36  ;;  %v1141_v18 = vld [vmem:[%s1637_s2 + $0x38] sm:$0xff]   ;;  %v522_v36 = vld [vmem:[%s1638_s5] sm:$0x3] }
  0xf2   :  { %v1198_v29 = vpop.f32.mrf.mxu0  ;;  %v1054_v20 = vunpack.c.h.bf16 %v1141_v18  ;;  %v1053_v22 = vunpack.c.l.bf16 %v1141_v18 }
  0xf3   :  { %v487_v33 = vmul.f32 %v1458_v52, %v391_v28  ;;  %v501_v47 = vpack.c.bf16 %v489_v41, %v488_v44  ;;  %v396_v7 = vadd.f32 %v1198_v29, %v1045_v0  ;;  %v1523_v28 = vpop.permute.xlu1 %479 }
  0xf4   :  { %v256_v34 = vpop.f32.mrf.mxu0 }
  0xf5   :  { %v500_v37 = vpack.c.bf16 %v487_v33, %v486_v32  ;;  %v394_v57 = vadd.f32 %v1041_v45, %v256_v34  ;;  %v492_v13 = vmul.f32 %v1466_v56, %v396_v7  ;;  %v524_v33 = vlaneseq }
  0xf6   :  { %v1199_v38 = vpop.f32.mrf.mxu0 }
  0xf7   :  { %657 = vmatmul.mubr.bf16.gmra.mxu0 %v499_v35  ;;  %667 = vmatmul.mubr.bf16.vlgmr.msra.gmra.mxu1 %v500_v37  ;;  %v490_v2 = vmul.f32 %v1462_v54, %v394_v57  ;;  %v397_v3 = vadd.f32 %v1199_v38, %v1046_v60  ;;  %v525_v34 = vshrl.u32 %v524_v33, 7 }
  0xf8   :  { %676 = vmatprep.mubr.bf16.mxu1 %v1263_v1  ;;  %v259_v43 = vpop.f32.mrf.mxu0 }
  0xf9   :  { %v395_v46 = vadd.f32 %v1042_v42, %v259_v43  ;;  %v493_v10 = vmul.f32 %v1464_v55, %v397_v3  ;;  %v526_v35 = vsub.s32 0, %v525_v34  ;;  %v530_v38 = vsub.s32 1, %v525_v34 }
  0xfa   :  { %v1202_v48 = vpop.f32.mrf.mxu0 }
  0xfb   :  { %v491_v62 = vmul.f32 %v1460_v53, %v395_v46  ;;  %v503_v16 = vpack.c.bf16 %v493_v10, %v492_v13  ;;  %v400_v27 = vadd.f32 %v1202_v48, %v1053_v22  ;;  %v1533_v37 = vrot.slane %v522_v36, %v526_v35 }
  0xfc   :  { %v272_v63 = vpop.f32.mrf.mxu0  ;;  %v1536_v41 = vrot.slane %v522_v36, %v530_v38 }
  0xfd   :  { %v502_v5 = vpack.c.bf16 %v491_v62, %v490_v2  ;;  %v398_v17 = vadd.f32 %v1049_v14, %v272_v63  ;;  %v496_v31 = vmul.f32 %v1527_v30, %v400_v27 }
  0xfe   :  { %v1203_v6 = vpop.f32.mrf.mxu0 }
  0xff   :  { %677 = vmatmul.mubr.bf16.gmra.mxu1 %v501_v47  ;;  %v494_v24 = vmul.f32 %v1483_v9, %v398_v17  ;;  %v401_v25 = vadd.f32 %v1203_v6, %v1054_v20 }
 0x100   :  { %686 = vmatprep.mubr.bf16.mxu1 %v1263_v1  ;;  %v275_v12 = vpop.f32.mrf.mxu0 }
 0x101   :  { %v399_v15 = vadd.f32 %v1050_v11, %v275_v12  ;;  %v497_v29 = vmul.f32 %v1523_v28, %v401_v25 }
 0x103   :  { %v495_v21 = vmul.f32 %v1478_v4, %v399_v15  ;;  %v505_v32 = vpack.c.bf16 %v497_v29, %v496_v31 }
 0x105   :  { %v504_v26 = vpack.c.bf16 %v495_v21, %v494_v24 }
 0x107   :  { %687 = vmatmul.mubr.bf16.gmra.mxu1 %v502_v5 }
 0x108   :  { %696 = vmatprep.mubr.bf16.mxu1 %v1263_v1 }
 0x10f   :  { %697 = vmatmul.mubr.bf16.gmra.mxu1 %v503_v16 }
 0x110   :  { %706 = vmatprep.mubr.bf16.mxu1 %v1263_v1 }
 0x117   :  { %707 = vmatmul.mubr.bf16.gmra.mxu1 %v504_v26 }
 0x118   :  { %716 = vmatprep.mubr.bf16.mxu1 %v1263_v1 }
 0x11f   :  { %717 = vmatmul.mubr.bf16.gmra.mxu1 %v505_v32 }
 0x1af   :  { %v648_v39 = vpop.f32.mrf.mxu0 }
 0x1b0   :  { %v649_v1 = vadd.f32 %v648_v39, %v1533_v37 }
 0x1b1   :  { %v650_v40 = vpop.f32.mrf.mxu0 }
 0x1b2   :  { %v727_v42 = vmax.f32 %v649_v1, 0.0  ;;  %v651_v46 = vadd.f32 %v650_v40, %v1536_v41 }
 0x1b3   :  { %v652_v43 = vpop.f32.mrf.mxu0 }
 0x1b4   :  { %v653_v44 = vadd.f32 %v652_v43, %v1533_v37  ;;  %v743_v57 = vmul.f32 %v727_v42, %v1473_v61 }
 0x1b5   :  { %v654_v45 = vpop.f32.mrf.mxu0 }
 0x1b6   :  { %v728_v47 = vmax.f32 %v653_v44, 0.0  ;;  %v655_v48 = vadd.f32 %v654_v45, %v1536_v41 }
 0x1b7   :  { %v658_v59 = vpop.f32.mrf.mxu0  ;;  %v668_v60 = vpop.f32.mrf.mxu1 }
 0x1b8   :  { %v744_v62 = vmul.f32 %v728_v47, %v1471_v58  ;;  %v1098_v63 = vpack.c.bf16 %v655_v48, %v651_v46  ;;  %v659_v0 = vadd.f32 %v658_v59, %v1533_v37  ;;  %v669_v2 = vadd.f32 %v668_v60, %v1533_v37 }
 0x1b9   :  { %v660_v3 = vpop.f32.mrf.mxu0  ;;  %v670_v5 = vpop.f32.mrf.mxu1 }
 0x1ba   :  { %v1058_v6 = vpack.c.bf16 %v744_v62, %v743_v57  ;;  %1099 = vst [vmem:[%s1639_s7] sm:$0xff] %v1098_v63   ;;  %v729_v7 = vmax.f32 %v659_v0, 0.0  ;;  %v731_v8 = vmax.f32 %v669_v2, 0.0  ;;  %v661_v12 = vadd.f32 %v660_v3, %v1536_v41 }
 0x1bb   :  { %v662_v10 = vpop.f32.mrf.mxu0  ;;  %v672_v61 = vpop.f32.mrf.mxu1  ;;  %v671_v13 = vadd.f32 %v670_v5, %v1536_v41 }
 0x1bc   :  { %1059 = vst [vmem:[%s1640_s6] sm:$0xff] %v1058_v6   ;;  %v663_v58 = vadd.f32 %v662_v10, %v1533_v37  ;;  %v673_v11 = vadd.f32 %v672_v61, %v1533_v37  ;;  %v745_v21 = vmul.f32 %v729_v7, %v1489_v23  ;;  %v747_v22 = vmul.f32 %v731_v8, %v1454_v50 }
 0x1bd   :  { %v664_v14 = vpop.f32.mrf.mxu0  ;;  %v674_v15 = vpop.f32.mrf.mxu1 }
 0x1be   :  { %v730_v16 = vmax.f32 %v663_v58, 0.0  ;;  %v732_v17 = vmax.f32 %v673_v11, 0.0  ;;  %v665_v18 = vadd.f32 %v664_v14, %v1536_v41  ;;  %v675_v20 = vadd.f32 %v674_v15, %v1536_v41 }
 0x1bf   :  { %v678_v24 = vpop.f32.mrf.mxu1 }
 0x1c0   :  { %v746_v25 = vmul.f32 %v730_v16, %v1487_v19  ;;  %v748_v26 = vmul.f32 %v732_v17, %v1458_v52  ;;  %v1103_v27 = vpack.c.bf16 %v665_v18, %v661_v12  ;;  %v1108_v29 = vpack.c.bf16 %v675_v20, %v671_v13 }
 0x1c1   :  { %v679_v31 = vadd.f32 %v678_v24, %v1533_v37  ;;  %v680_v32 = vpop.f32.mrf.mxu1 }
 0x1c2   :  { %v1063_v33 = vpack.c.bf16 %v746_v25, %v745_v21  ;;  %v1068_v34 = vpack.c.bf16 %v748_v26, %v747_v22  ;;  %1149 = vst [vmem:[%s1639_s7 + $0x8] sm:$0xff] %v1103_v27   ;;  %1150 = vst [vmem:[%s1639_s7 + $0x10] sm:$0xff] %v1108_v29   ;;  %v681_v35 = vadd.f32 %v680_v32, %v1536_v41 }
 0x1c3   :  { %v682_v50 = vpop.f32.mrf.mxu1  ;;  %v733_v52 = vmax.f32 %v679_v31, 0.0 }
 0x1c4   :  { %1142 = vst [vmem:[%s1640_s6 + $0x8] sm:$0xff] %v1063_v33   ;;  %1143 = vst [vmem:[%s1640_s6 + $0x10] sm:$0xff] %v1068_v34   ;;  %v683_v19 = vadd.f32 %v682_v50, %v1533_v37 }
 0x1c5   :  { %v684_v23 = vpop.f32.mrf.mxu1  ;;  %v749_v1 = vmul.f32 %v733_v52, %v1452_v49 }
 0x1c6   :  { %v734_v36 = vmax.f32 %v683_v19, 0.0  ;;  %v685_v38 = vadd.f32 %v684_v23, %v1536_v41 }
 0x1c7   :  { %v688_v39 = vpop.f32.mrf.mxu1 }
 0x1c8   :  { %v750_v40 = vmul.f32 %v734_v36, %v1456_v51  ;;  %v1113_v42 = vpack.c.bf16 %v685_v38, %v681_v35  ;;  %v689_v43 = vadd.f32 %v688_v39, %v1533_v37 }
 0x1c9   :  { %v690_v44 = vpop.f32.mrf.mxu1 }
 0x1ca   :  { %v1073_v45 = vpack.c.bf16 %v750_v40, %v749_v1  ;;  %1151 = vst [vmem:[%s1639_s7 + $0x18] sm:$0xff] %v1113_v42   ;;  %v735_v47 = vmax.f32 %v689_v43, 0.0  ;;  %v691_v51 = vadd.f32 %v690_v44, %v1536_v41 }
 0x1cb   :  { %v692_v46 = vpop.f32.mrf.mxu1 }
 0x1cc   :  { %1144 = vst [vmem:[%s1640_s6 + $0x18] sm:$0xff] %v1073_v45   ;;  %v693_v48 = vadd.f32 %v692_v46, %v1533_v37  ;;  %v751_v62 = vmul.f32 %v735_v47, %v1462_v54 }
 0x1cd   :  { %v694_v49 = vpop.f32.mrf.mxu1 }
 0x1ce   :  { %v736_v57 = vmax.f32 %v693_v48, 0.0  ;;  %v695_v59 = vadd.f32 %v694_v49, %v1536_v41 }
 0x1cf   :  { %v698_v60 = vpop.f32.mrf.mxu1 }
 0x1d0   :  { %v752_v63 = vmul.f32 %v736_v57, %v1460_v53  ;;  %v1118_v0 = vpack.c.bf16 %v695_v59, %v691_v51  ;;  %v699_v2 = vadd.f32 %v698_v60, %v1533_v37 }
 0x1d1   :  { %v700_v3 = vpop.f32.mrf.mxu1 }
 0x1d2   :  { %v1078_v5 = vpack.c.bf16 %v752_v63, %v751_v62  ;;  %1152 = vst [vmem:[%s1639_s7 + $0x20] sm:$0xff] %v1118_v0   ;;  %v737_v7 = vmax.f32 %v699_v2, 0.0  ;;  %v701_v53 = vadd.f32 %v700_v3, %v1536_v41 }
 0x1d3   :  { %v702_v6 = vpop.f32.mrf.mxu1 }
 0x1d4   :  { %1145 = vst [vmem:[%s1640_s6 + $0x20] sm:$0xff] %v1078_v5   ;;  %v703_v8 = vadd.f32 %v702_v6, %v1533_v37  ;;  %v753_v11 = vmul.f32 %v737_v7, %v1466_v56 }
 0x1d5   :  { %v704_v54 = vpop.f32.mrf.mxu1 }
 0x1d6   :  { %v738_v10 = vmax.f32 %v703_v8, 0.0  ;;  %v705_v61 = vadd.f32 %v704_v54, %v1536_v41 }
 0x1d7   :  { %v708_v58 = vpop.f32.mrf.mxu1 }
 0x1d8   :  { %v754_v12 = vmul.f32 %v738_v10, %v1464_v55  ;;  %v1123_v13 = vpack.c.bf16 %v705_v61, %v701_v53  ;;  %v709_v14 = vadd.f32 %v708_v58, %v1533_v37 }
 0x1d9   :  { %v710_v15 = vpop.f32.mrf.mxu1 }
 0x1da   :  { %v1083_v16 = vpack.c.bf16 %v754_v12, %v753_v11  ;;  %1153 = vst [vmem:[%s1639_s7 + $0x28] sm:$0xff] %v1123_v13   ;;  %v739_v18 = vmax.f32 %v709_v14, 0.0  ;;  %v711_v55 = vadd.f32 %v710_v15, %v1536_v41 }
 0x1db   :  { %v712_v17 = vpop.f32.mrf.mxu1 }
 0x1dc   :  { %1146 = vst [vmem:[%s1640_s6 + $0x28] sm:$0xff] %v1083_v16   ;;  %v713_v20 = vadd.f32 %v712_v17, %v1533_v37  ;;  %v755_v25 = vmul.f32 %v739_v18, %v1483_v9 }
 0x1dd   :  { %v714_v56 = vpop.f32.mrf.mxu1 }
 0x1de   :  { %v740_v21 = vmax.f32 %v713_v20, 0.0  ;;  %v715_v22 = vadd.f32 %v714_v56, %v1536_v41 }
 0x1df   :  { %v718_v24 = vpop.f32.mrf.mxu1 }
 0x1e0   :  { %v756_v26 = vmul.f32 %v740_v21, %v1478_v4  ;;  %v1128_v27 = vpack.c.bf16 %v715_v22, %v711_v55  ;;  %v719_v29 = vadd.f32 %v718_v24, %v1533_v37 }
 0x1e1   :  { %v720_v31 = vpop.f32.mrf.mxu1 }
 0x1e2   :  { %v1088_v32 = vpack.c.bf16 %v756_v26, %v755_v25  ;;  %1154 = vst [vmem:[%s1639_s7 + $0x30] sm:$0xff] %v1128_v27   ;;  %v741_v34 = vmax.f32 %v719_v29, 0.0  ;;  %v721_v4 = vadd.f32 %v720_v31, %v1536_v41 }
 0x1e3   :  { %v722_v33 = vpop.f32.mrf.mxu1 }
 0x1e4   :  { %1147 = vst [vmem:[%s1640_s6 + $0x30] sm:$0xff] %v1088_v32   ;;  %v723_v50 = vadd.f32 %v722_v33, %v1533_v37  ;;  %v757_v23 = vmul.f32 %v741_v34, %v1527_v30 }
 0x1e5   :  { %v724_v9 = vpop.f32.mrf.mxu1 }
 0x1e6   :  { %v742_v52 = vmax.f32 %v723_v50, 0.0  ;;  %v725_v19 = vadd.f32 %v724_v9, %v1536_v41 }
 0x1e8   :  { %v758_v35 = vmul.f32 %v742_v52, %v1523_v28  ;;  %v1133_v36 = vpack.c.bf16 %v725_v19, %v721_v4 }
 0x1ea   :  { %v1093_v38 = vpack.c.bf16 %v758_v35, %v757_v23  ;;  %1155 = vst [vmem:[%s1639_s7 + $0x38] sm:$0xff] %v1133_v36  }
 0x1ec   :  { %1148 = vst [vmem:[%s1640_s6 + $0x38] sm:$0xff] %v1093_v38  }

// kernel: dominant_forward.6
= control target key start
LH: loop header
LB: loop body
LE: loop exit
PB: predicated region body
PF: predicated region fallthrough
CT: control target
= control target key end

     0   :  { %v1194_v2 = vmov 0   ;;  %s1454_s0 = inlined_call_operand.vmem [shape: bf16[128,128], index: 0, kind: input, shape index: {}]   ;;  %s1455_s1 = inlined_call_operand.vmem [shape: bf16[128,128], index: 1, kind: input, shape index: {}, may-alias: {1,2}]   ;;  %s1456_s2 = inlined_call_operand.vmem [shape: bf16[128,128], index: 2, kind: input, shape index: {}, may-alias: {1,2}]   ;;  %s1457_s3 = inlined_call_operand.vmem [shape: f32[128,1], index: 3, kind: input, shape index: {}]   ;;  %s1458_s4 = inlined_call_operand.vmem [shape: bf16[128,128], index: 4, kind: input, shape index: {}]   ;;  %s1459_s5 = inlined_call_operand.vmem [shape: f32[1,128], index: 5, kind: input, shape index: {}]   ;;  %s1460_s6 = inlined_call_operand.vmem [shape: f32[128,128], index: 6, kind: output, shape index: {0}]   ;;  %s1461_s7 = inlined_call_operand.hbm [shape: bf16[128,128], index: 7, kind: output, shape index: {1}]  }
   0x1   :  { %v1148_v0 = vld [vmem:[%s1455_s1 + $0x38] sm:$0xff]   ;;  %v1149_v1 = vld [vmem:[%s1455_s1 + $0x30] sm:$0xff]   ;;  %1146 = vset.pattern.permute.xlu0 %v1194_v2  ;;  %1147 = vset.pattern.permute.xlu1 %v1194_v2  ;;  %v1150_v3 = vld [vmem:[%s1455_s1 + $0x28] sm:$0xff]  }
   0x2   :  { %1078 = vmatprep.subr.bf16.mxu0 %v1148_v0  ;;  %v1151_v4 = vld [vmem:[%s1455_s1 + $0x20] sm:$0xff]   ;;  %v1152_v6 = vld [vmem:[%s1455_s1 + $0x18] sm:$0xff]   ;;  %v325_v8 = vld [vmem:[%s1457_s3 + $0x10] sm:$0xff] }
   0x3   :  { %1079 = vmatpush3.bf16.msra.mxu0 %v1148_v0  ;;  %v1156_v5 = vld [vmem:[%s1454_s0] sm:$0xff]   ;;  %415 = vperm.xlu1 %1147, %v325_v8   ;;  %v324_v9 = vld [vmem:[%s1457_s3 + $0x8] sm:$0xff]  ;;  %v326_v10 = vld [vmem:[%s1457_s3 + $0x18] sm:$0xff] }
   0x4   :  { %1080 = vmatprep.subr.bf16.mxu0 %v1149_v1  ;;  %1094 = vmatprep.mubr.bf16.mxu0 %v1156_v5  ;;  %v323_v7 = vld [vmem:[%s1457_s3] sm:$0xff]  ;;  %v1153_v11 = vld [vmem:[%s1455_s1 + $0x10] sm:$0xff]   ;;  %v328_v13 = vld [vmem:[%s1457_s3 + $0x28] sm:$0xff] }
   0x5   :  { %405 = vperm.xlu0 %1146, %v323_v7   ;;  %v327_v12 = vld [vmem:[%s1457_s3 + $0x20] sm:$0xff]  ;;  %v1154_v14 = vld [vmem:[%s1455_s1 + $0x8] sm:$0xff]   ;;  %v329_v15 = vld [vmem:[%s1457_s3 + $0x30] sm:$0xff] }
   0x6   :  { %v330_v16 = vld [vmem:[%s1457_s3 + $0x38] sm:$0xff]  ;;  %v1155_v17 = vld [vmem:[%s1455_s1] sm:$0xff]   ;;  %v332_v19 = vld [vmem:[%s1457_s3 + $0x48] sm:$0xff] }
   0x7   :  { %1081 = vmatpush3.bf16.msra.mxu0 %v1149_v1  ;;  %420 = vperm.xlu1 %1147, %v326_v10   ;;  %v331_v18 = vld [vmem:[%s1457_s3 + $0x40] sm:$0xff] }
   0x8   :  { %1082 = vmatprep.subr.bf16.mxu0 %v1150_v3 }
   0x9   :  { %410 = vperm.xlu0 %1146, %v324_v9  }
   0xb   :  { %1083 = vmatpush3.bf16.msra.mxu0 %v1150_v3  ;;  %430 = vperm.xlu1 %1147, %v328_v13  }
   0xc   :  { %1084 = vmatprep.subr.bf16.mxu0 %v1151_v4 }
   0xd   :  { %425 = vperm.xlu0 %1146, %v327_v12  }
   0xf   :  { %1085 = vmatpush3.bf16.msra.mxu0 %v1151_v4  ;;  %440 = vperm.xlu1 %1147, %v330_v16  }
  0x10   :  { %1086 = vmatprep.subr.bf16.mxu0 %v1152_v6 }
  0x11   :  { %435 = vperm.xlu0 %1146, %v329_v15  }
  0x13   :  { %1087 = vmatpush3.bf16.msra.mxu0 %v1152_v6 }
  0x14   :  { %1088 = vmatprep.subr.bf16.mxu0 %v1153_v11 }
  0x17   :  { %1089 = vmatpush3.bf16.msra.mxu0 %v1153_v11 }
  0x18   :  { %1090 = vmatprep.subr.bf16.mxu0 %v1154_v14 }
  0x19   :  { %13 = vsyncpa [#allocation4], 0  ;;  %445 = vperm.xlu0 %1146, %v331_v18   ;;  %450 = vperm.xlu1 %1147, %v332_v19   ;;  %v1157_v20 = vld [vmem:[%s1454_s0 + $0x8] sm:$0xff]   ;;  %v333_v21 = vld [vmem:[%s1457_s3 + $0x50] sm:$0xff]  ;;  %s1195_s23 = smov [#allocation3]  }
  0x1a   :  { %v334_v22 = vld [vmem:[%s1457_s3 + $0x58] sm:$0xff]  ;;  %v1158_v23 = vld [vmem:[%s1454_s0 + $0x10] sm:$0xff]   ;;  %v335_v24 = vld [vmem:[%s1457_s3 + $0x60] sm:$0xff]  ;;  %s890_s24 = sshll.u32 %s1195_s23, 4  ;;  %s891_s24 = int_to_ptr.vmem [resolvable:$true] %s890_s24 }
  0x1b   :  { %1091 = vmatpush3.bf16.msra.mxu0 %v1154_v14  ;;  %v336_v25 = vld [vmem:[%s1457_s3 + $0x68] sm:$0xff]  ;;  %v1159_v26 = vld [vmem:[%s1454_s0 + $0x18] sm:$0xff]   ;;  %v337_v27 = vld [vmem:[%s1457_s3 + $0x70] sm:$0xff]  ;;  %p1177_p1 = scmp.lt.s32.totalorder %s891_s24, %s891_s24 }
  0x1c   :  { %1092 = vmatprep.subr.bf16.mxu0 %v1155_v17  ;;  %v338_v28 = vld [vmem:[%s1457_s3 + $0x78] sm:$0xff]  ;;  %v1160_v29 = vld [vmem:[%s1454_s0 + $0x20] sm:$0xff]   ;;  %v1161_v31 = vld [vmem:[%s1454_s0 + $0x28] sm:$0xff]  }
  0x1d   :  { %455 = vperm.xlu0 %1146, %v333_v21   ;;  %460 = vperm.xlu1 %1147, %v334_v22   ;;  %v1164_v30 = vld [vmem:[%s1458_s4 + $0x38] sm:$0xff]   ;;  %v1162_v32 = vld [vmem:[%s1454_s0 + $0x30] sm:$0xff]   ;;  %v1166_v34 = vld [vmem:[%s1458_s4 + $0x28] sm:$0xff]  }
  0x1e   :  { %1110 = vmatprep.subr.bf16.mxu1 %v1164_v30  ;;  %v1165_v33 = vld [vmem:[%s1458_s4 + $0x30] sm:$0xff]   ;;  %v1163_v35 = vld [vmem:[%s1454_s0 + $0x38] sm:$0xff]   ;;  %v1167_v36 = vld [vmem:[%s1458_s4 + $0x20] sm:$0xff]   ;;  %s1172_s0 = scalar_lea.vmem %s891_s24, 1024 }
  0x1f   :  { %1093 = vmatpush3.bf16.msra.mxu0 %v1155_v17  ;;  %1111 = vmatpush3.bf16.msra.mxu1 %v1164_v30  ;;  %v1168_v37 = vld [vmem:[%s1458_s4 + $0x18] sm:$0xff]   ;;  %v1169_v38 = vld [vmem:[%s1458_s4 + $0x10] sm:$0xff]   ;;  %v1170_v39 = vld [vmem:[%s1458_s4 + $0x8] sm:$0xff]   ;;  %p1173_p0 = scmp.ne.s32.totalorder %s891_s24, %s1172_s0  ;;  %p1178_p2 = scmp.lt.s32.totalorder %s1172_s0, %s1172_s0 }
  0x20   :  { %1112 = vmatprep.subr.bf16.mxu1 %v1165_v33  ;;  %v1171_v40 = vld [vmem:[%s1458_s4] sm:$0xff]   ;;  %v1032_v46 = vld [vmem:[%s1456_s2 + $0x8] sm:$0xff]   ;;  %v1033_v60 = vld [vmem:[%s1456_s2 + $0x10] sm:$0xff]  }
  0x21   :  { %465 = vperm.xlu0 %1146, %v335_v24   ;;  %470 = vperm.xlu1 %1147, %v336_v25   ;;  %v961_v45 = vld [vmem:[%s1456_s2] sm:$0xff]   ;;  %v967_v50 = vunpack.c.h.bf16 %v1032_v46  ;;  %v966_v51 = vunpack.c.l.bf16 %v1032_v46  ;;  %v1034_v63 = vld [vmem:[%s1456_s2 + $0x18] sm:$0xff]   ;;  %v970_v3 = vunpack.c.l.bf16 %v1033_v60  ;;  %v971_v11 = vunpack.c.h.bf16 %v1033_v60  ;;  %p1179_p3 = por %p1178_p2, %p1177_p1 }
  0x22   :  { %1095 = vmatmul.mubr.bf16.vlgmr.msra.gmra.mxu0 %v1157_v20  ;;  %v962_v49 = vunpack.c.l.bf16 %v961_v45  ;;  %v963_v54 = vunpack.c.h.bf16 %v961_v45  ;;  %v975_v4 = vunpack.c.h.bf16 %v1034_v63 }
  0x23   :  { %1098 = vmatprep.mubr.bf16.mxu0 %v1158_v23  ;;  %1113 = vmatpush3.bf16.msra.mxu1 %v1165_v33  ;;  %p1180_p4 = pnand %p1179_p3, %p1173_p0 }
  0x24   :  { %1114 = vmatprep.subr.bf16.mxu1 %v1166_v34 }
  0x25   :  { %475 = vperm.xlu0 %1146, %v337_v27   ;;  %480 = vperm.xlu1 %1147, %v338_v28  }
  0x27   :  { %1115 = vmatpush3.bf16.msra.mxu1 %v1166_v34 }
  0x28   :  { %1116 = vmatprep.subr.bf16.mxu1 %v1167_v36 }
  0x29   :  { %709 = vperm.xlu0 %1146, %v323_v7   ;;  %714 = vperm.xlu1 %1147, %v324_v9  }
  0x2a   :  { %1099 = vmatmul.mubr.bf16.gmra.mxu0 %v1159_v26 }
  0x2b   :  { %1102 = vmatprep.mubr.bf16.mxu0 %v1160_v29  ;;  %1117 = vmatpush3.bf16.msra.mxu1 %v1167_v36 }
  0x2c   :  { %1118 = vmatprep.subr.bf16.mxu1 %v1168_v37 }
  0x2d   :  { %719 = vperm.xlu0 %1146, %v325_v8   ;;  %724 = vperm.xlu1 %1147, %v326_v10   ;;  %v974_v8 = vunpack.c.l.bf16 %v1034_v63 }
  0x2f   :  { %1119 = vmatpush3.bf16.msra.mxu1 %v1168_v37 }
  0x30   :  { %1120 = vmatprep.subr.bf16.mxu1 %v1169_v38 }
  0x31   :  { %729 = vperm.xlu0 %1146, %v327_v12   ;;  %734 = vperm.xlu1 %1147, %v328_v13  }
  0x32   :  { %1103 = vmatmul.mubr.bf16.gmra.mxu0 %v1161_v31 }
  0x33   :  { %1106 = vmatprep.mubr.bf16.mxu0 %v1162_v32  ;;  %1121 = vmatpush3.bf16.msra.mxu1 %v1169_v38 }
  0x34   :  { %1122 = vmatprep.subr.bf16.mxu1 %v1170_v39 }
  0x35   :  { %739 = vperm.xlu0 %1146, %v329_v15   ;;  %744 = vperm.xlu1 %1147, %v330_v16  }
  0x37   :  { %1123 = vmatpush3.bf16.msra.mxu1 %v1170_v39 }
  0x38   :  { %1124 = vmatprep.subr.bf16.mxu1 %v1171_v40 }
  0x39   :  { %749 = vperm.xlu0 %1146, %v331_v18   ;;  %754 = vperm.xlu1 %1147, %v332_v19   ;;  %v1035_v19 = vld [vmem:[%s1456_s2 + $0x20] sm:$0xff]  }
  0x3a   :  { %1107 = vmatmul.mubr.bf16.gmra.mxu0 %v1163_v35  ;;  %v979_v34 = vunpack.c.h.bf16 %v1035_v19 }
  0x3b   :  { %1125 = vmatpush3.bf16.msra.mxu1 %v1171_v40 }
  0x3d   :  { %759 = vperm.xlu0 %1146, %v333_v21   ;;  %764 = vperm.xlu1 %1147, %v334_v22   ;;  %v1036_v22 = vld [vmem:[%s1456_s2 + $0x28] sm:$0xff]  }
  0x3e   :  { %v982_v30 = vunpack.c.l.bf16 %v1036_v22 }
  0x41   :  { %769 = vperm.xlu0 %1146, %v335_v24   ;;  %774 = vperm.xlu1 %1147, %v336_v25  }
  0x45   :  { %779 = vperm.xlu0 %1146, %v337_v27   ;;  %784 = vperm.xlu1 %1147, %v338_v28   ;;  %v978_v27 = vunpack.c.l.bf16 %v1035_v19  ;;  %v983_v28 = vunpack.c.h.bf16 %v1036_v22 }
  0x7e   :  { %v416_v41 = vpop.permute.xlu1 %415 }
  0x80   :  { %v406_v42 = vpop.permute.xlu0 %405 }
  0x82   :  { %v421_v43 = vpop.permute.xlu1 %420 }
  0x84   :  { %v411_v44 = vpop.permute.xlu0 %410 }
  0x86   :  { %v431_v48 = vpop.permute.xlu1 %430 }
  0x88   :  { %v426_v53 = vpop.permute.xlu0 %425 }
  0x8a   :  { %v441_v61 = vpop.permute.xlu1 %440 }
  0x8c   :  { %v436_v2 = vpop.permute.xlu0 %435 }
  0x94   :  { %v451_v14 = vpop.permute.xlu1 %450  ;;  %v446_v20 = vpop.permute.xlu0 %445 }
  0x98   :  { %v461_v32 = vpop.permute.xlu1 %460  ;;  %v456_v37 = vpop.permute.xlu0 %455 }
  0xe2   :  { %v1096_v47 = vpop.f32.mrf.mxu0 }
  0xe3   :  { %v389_v58 = vadd.f32 %v1096_v47, %v966_v51  ;;  %v471_v47 = vpop.permute.xlu1 %470 }
  0xe4   :  { %v225_v52 = vpop.f32.mrf.mxu0 }
  0xe5   :  { %v387_v56 = vadd.f32 %v962_v49, %v225_v52  ;;  %v485_v7 = vmul.f32 %v416_v41, %v389_v58 }
  0xe6   :  { %v1097_v55 = vpop.f32.mrf.mxu0 }
  0xe7   :  { %v390_v57 = vadd.f32 %v1097_v55, %v967_v50  ;;  %v483_v5 = vmul.f32 %v406_v42, %v387_v56  ;;  %v1037_v42 = vld [vmem:[%s1456_s2 + $0x30] sm:$0xff]   ;;  %v466_v55 = vpop.permute.xlu0 %465 }
  0xe8   :  { %v228_v59 = vpop.f32.mrf.mxu0  ;;  %v986_v50 = vunpack.c.l.bf16 %v1037_v42 }
  0xe9   :  { %v388_v62 = vadd.f32 %v963_v54, %v228_v59  ;;  %v486_v0 = vmul.f32 %v421_v43, %v390_v57  ;;  %v987_v57 = vunpack.c.h.bf16 %v1037_v42 }
  0xea   :  { %v1100_v1 = vpop.f32.mrf.mxu0 }
  0xeb   :  { %v484_v6 = vmul.f32 %v411_v44, %v388_v62  ;;  %v500_v13 = vpack.c.bf16 %v486_v0, %v485_v7  ;;  %v393_v17 = vadd.f32 %v1100_v1, %v974_v8  ;;  %v1038_v44 = vld [vmem:[%s1456_s2 + $0x38] sm:$0xff]   ;;  %v481_v0 = vpop.permute.xlu1 %480 }
  0xec   :  { %v241_v9 = vpop.f32.mrf.mxu0  ;;  %v991_v51 = vunpack.c.h.bf16 %v1038_v44 }
  0xed   :  { %v499_v10 = vpack.c.bf16 %v484_v6, %v483_v5  ;;  %v391_v15 = vadd.f32 %v970_v3, %v241_v9  ;;  %v489_v29 = vmul.f32 %v436_v2, %v393_v17  ;;  %v476_v3 = vpop.permute.xlu0 %475 }
  0xee   :  { %v1101_v12 = vpop.f32.mrf.mxu0 }
  0xef   :  { %v394_v16 = vadd.f32 %v1101_v12, %v975_v4  ;;  %1126 = vmatprep.mubr.bf16.mxu1 %v499_v10  ;;  %v487_v25 = vmul.f32 %v426_v53, %v391_v15  ;;  %v990_v53 = vunpack.c.l.bf16 %v1038_v44  ;;  %v715_v10 = vpop.permute.xlu1 %714 }
  0xf0   :  { %v244_v18 = vpop.f32.mrf.mxu0  ;;  %1127 = vmatmul.mubr.bf16.vlgmr.msra.gmra.mxu1 %v500_v13  ;;  %v1385_v13 = vld [vmem:[%s1459_s5] ss:$0 sm:$0xff] }
  0xf1   :  { %v392_v21 = vadd.f32 %v971_v11, %v244_v18  ;;  %v490_v23 = vmul.f32 %v441_v61, %v394_v16  ;;  %v710_v9 = vpop.permute.xlu0 %709 }
  0xf2   :  { %v1104_v24 = vpop.f32.mrf.mxu0 }
  0xf3   :  { %v488_v26 = vmul.f32 %v431_v48, %v392_v21  ;;  %v502_v36 = vpack.c.bf16 %v490_v23, %v489_v29  ;;  %v397_v40 = vadd.f32 %v1104_v24, %v982_v30  ;;  %v725_v12 = vpop.permute.xlu1 %724 }
  0xf4   :  { %v257_v31 = vpop.f32.mrf.mxu0 }
  0xf5   :  { %v501_v33 = vpack.c.bf16 %v488_v26, %v487_v25  ;;  %v395_v38 = vadd.f32 %v978_v27, %v257_v31  ;;  %v493_v52 = vmul.f32 %v456_v37, %v397_v40  ;;  %v720_v11 = vpop.permute.xlu0 %719 }
  0xf6   :  { %v1105_v35 = vpop.f32.mrf.mxu0 }
  0xf7   :  { %v398_v39 = vadd.f32 %v1105_v35, %v983_v28  ;;  %1130 = vmatprep.mubr.bf16.mxu1 %v501_v33  ;;  %v491_v48 = vmul.f32 %v446_v20, %v395_v38  ;;  %v735_v15 = vpop.permute.xlu1 %734 }
  0xf8   :  { %v260_v41 = vpop.f32.mrf.mxu0  ;;  %1131 = vmatmul.mubr.bf16.gmra.mxu1 %v502_v36 }
  0xf9   :  { %v396_v43 = vadd.f32 %v979_v34, %v260_v41  ;;  %v494_v45 = vmul.f32 %v461_v32, %v398_v39 }
  0xfa   :  { %v1108_v46 = vpop.f32.mrf.mxu0 }
  0xfb   :  { %v492_v49 = vmul.f32 %v451_v14, %v396_v43  ;;  %v504_v59 = vpack.c.bf16 %v494_v45, %v493_v52  ;;  %v401_v62 = vadd.f32 %v1108_v46, %v990_v53  ;;  %v730_v14 = vpop.permute.xlu0 %729  ;;  %v745_v23 = vpop.permute.xlu1 %744 }
  0xfc   :  { %v273_v54 = vpop.f32.mrf.mxu0 }
  0xfd   :  { %v503_v56 = vpack.c.bf16 %v492_v49, %v491_v48  ;;  %v399_v60 = vadd.f32 %v986_v50, %v273_v54  ;;  %v497_v6 = vmul.f32 %v476_v3, %v401_v62 }
  0xfe   :  { %v1109_v58 = vpop.f32.mrf.mxu0 }
  0xff   :  { %v402_v61 = vadd.f32 %v1109_v58, %v991_v51  ;;  %1134 = vmatprep.mubr.bf16.mxu1 %v503_v56  ;;  %v495_v4 = vmul.f32 %v466_v55, %v399_v60  ;;  %v740_v21 = vpop.permute.xlu0 %739  ;;  %v755_v37 = vpop.permute.xlu1 %754 }
 0x100   :  { %v276_v63 = vpop.f32.mrf.mxu0  ;;  %1135 = vmatmul.mubr.bf16.gmra.mxu1 %v504_v59 }
 0x101   :  { %v400_v1 = vadd.f32 %v987_v57, %v276_v63  ;;  %v498_v2 = vmul.f32 %v481_v0, %v402_v61 }
 0x103   :  { %v496_v5 = vmul.f32 %v471_v47, %v400_v1  ;;  %v506_v8 = vpack.c.bf16 %v498_v2, %v497_v6  ;;  %v750_v34 = vpop.permute.xlu0 %749  ;;  %v765_v50 = vpop.permute.xlu1 %764 }
 0x105   :  { %v505_v7 = vpack.c.bf16 %v496_v5, %v495_v4 }
 0x107   :  { %1138 = vmatprep.mubr.bf16.mxu1 %v505_v7  ;;  %v760_v45 = vpop.permute.xlu0 %759  ;;  %v775_v61 = vpop.permute.xlu1 %774 }
 0x108   :  { %1139 = vmatmul.mubr.bf16.gmra.mxu1 %v506_v8 }
 0x10b   :  { %v770_v57 = vpop.permute.xlu0 %769 }
 0x10f   :  { %v780_v7 = vpop.permute.xlu0 %779 }
 0x1b0   :  { %v1128_v16 = vpop.f32.mrf.mxu1 }
 0x1b1   :  { %v621_v17 = vadd.f32 %v1128_v16, %v1385_v13 }
 0x1b2   :  { %v612_v18 = vpop.f32.mrf.mxu1 }
 0x1b3   :  { %677 = vst [vmem:[%s1460_s6 + $0x10] sm:$0xff] %v621_v17  ;;  %v613_v19 = vadd.f32 %v1385_v13, %v612_v18  ;;  %v789_v25 = vmul.f32 %v720_v11, %v621_v17 }
 0x1b4   :  { %v1129_v20 = vpop.f32.mrf.mxu1 }
 0x1b5   :  { %675 = vst [vmem:[%s1460_s6] sm:$0xff] %v613_v19  ;;  %v624_v22 = vadd.f32 %v1129_v20, %v1385_v13  ;;  %v787_v29 = vmul.f32 %v710_v9, %v613_v19  ;;  %v785_v9 = vpop.permute.xlu1 %784 }
 0x1b6   :  { %v615_v24 = vpop.f32.mrf.mxu1 }
 0x1b7   :  { %678 = vst [vmem:[%s1460_s6 + $0x18] sm:$0xff] %v624_v22  ;;  %v790_v26 = vmul.f32 %v725_v12, %v624_v22  ;;  %v616_v27 = vadd.f32 %v1385_v13, %v615_v24 }
 0x1b8   :  { %v1132_v28 = vpop.f32.mrf.mxu1 }
 0x1b9   :  { %v1000_v30 = vpack.c.bf16 %v790_v26, %v789_v25  ;;  %676 = vst [vmem:[%s1460_s6 + $0x8] sm:$0xff] %v616_v27  ;;  %v788_v31 = vmul.f32 %v715_v10, %v616_v27  ;;  %v637_v32 = vadd.f32 %v1132_v28, %v1385_v13 }
 0x1ba   :  { %v628_v33 = vpop.f32.mrf.mxu1 }
 0x1bb   :  { %1039 = vst [vmem:[#allocation3 + $0x8] sm:$0xff] %v1000_v30   ;;  %v995_v35 = vpack.c.bf16 %v788_v31, %v787_v29  ;;  %681 = vst [vmem:[%s1460_s6 + $0x30] sm:$0xff] %v637_v32  ;;  %v629_v36 = vadd.f32 %v1385_v13, %v628_v33  ;;  %v793_v41 = vmul.f32 %v740_v21, %v637_v32 }
 0x1bc   :  { %v1133_v38 = vpop.f32.mrf.mxu1 }
 0x1bd   :  { %996 = vst [vmem:[#allocation3] sm:$0xff] %v995_v35   ;;  %679 = vst [vmem:[%s1460_s6 + $0x20] sm:$0xff] %v629_v36  ;;  %v640_v39 = vadd.f32 %v1133_v38, %v1385_v13  ;;  %v791_v46 = vmul.f32 %v730_v14, %v629_v36 }
 0x1be   :  { %v631_v40 = vpop.f32.mrf.mxu1 }
 0x1bf   :  { %682 = vst [vmem:[%s1460_s6 + $0x38] sm:$0xff] %v640_v39  ;;  %v794_v42 = vmul.f32 %v745_v23, %v640_v39  ;;  %v632_v43 = vadd.f32 %v1385_v13, %v631_v40 }
 0x1c0   :  { %v1136_v44 = vpop.f32.mrf.mxu1 }
 0x1c1   :  { %v1010_v47 = vpack.c.bf16 %v794_v42, %v793_v41  ;;  %680 = vst [vmem:[%s1460_s6 + $0x28] sm:$0xff] %v632_v43  ;;  %v792_v48 = vmul.f32 %v735_v15, %v632_v43  ;;  %v653_v49 = vadd.f32 %v1136_v44, %v1385_v13 }
 0x1c2   :  { %v644_v51 = vpop.f32.mrf.mxu1 }
 0x1c3   :  { %1041 = vst [vmem:[#allocation3 + $0x18] sm:$0xff] %v1010_v47   ;;  %v1005_v52 = vpack.c.bf16 %v792_v48, %v791_v46  ;;  %685 = vst [vmem:[%s1460_s6 + $0x50] sm:$0xff] %v653_v49  ;;  %v645_v53 = vadd.f32 %v1385_v13, %v644_v51  ;;  %v797_v58 = vmul.f32 %v760_v45, %v653_v49 }
 0x1c4   :  { %v1137_v54 = vpop.f32.mrf.mxu1 }
 0x1c5   :  { %1040 = vst [vmem:[#allocation3 + $0x10] sm:$0xff] %v1005_v52   ;;  %683 = vst [vmem:[%s1460_s6 + $0x40] sm:$0xff] %v645_v53  ;;  %v656_v55 = vadd.f32 %v1137_v54, %v1385_v13  ;;  %v795_v63 = vmul.f32 %v750_v34, %v645_v53 }
 0x1c6   :  { %v647_v56 = vpop.f32.mrf.mxu1 }
 0x1c7   :  { %686 = vst [vmem:[%s1460_s6 + $0x58] sm:$0xff] %v656_v55  ;;  %v798_v59 = vmul.f32 %v765_v50, %v656_v55  ;;  %v648_v60 = vadd.f32 %v1385_v13, %v647_v56 }
 0x1c8   :  { %v1140_v62 = vpop.f32.mrf.mxu1 }
 0x1c9   :  { %v1020_v0 = vpack.c.bf16 %v798_v59, %v797_v58  ;;  %684 = vst [vmem:[%s1460_s6 + $0x48] sm:$0xff] %v648_v60  ;;  %v796_v1 = vmul.f32 %v755_v37, %v648_v60  ;;  %v669_v2 = vadd.f32 %v1140_v62, %v1385_v13 }
 0x1ca   :  { %v660_v3 = vpop.f32.mrf.mxu1 }
 0x1cb   :  { %1043 = vst [vmem:[#allocation3 + $0x28] sm:$0xff] %v1020_v0   ;;  %v1015_v4 = vpack.c.bf16 %v796_v1, %v795_v63  ;;  %689 = vst [vmem:[%s1460_s6 + $0x70] sm:$0xff] %v669_v2  ;;  %v661_v5 = vadd.f32 %v1385_v13, %v660_v3  ;;  %v801_v11 = vmul.f32 %v780_v7, %v669_v2 }
 0x1cc   :  { %v1141_v6 = vpop.f32.mrf.mxu1 }
 0x1cd   :  { %1042 = vst [vmem:[#allocation3 + $0x20] sm:$0xff] %v1015_v4   ;;  %687 = vst [vmem:[%s1460_s6 + $0x60] sm:$0xff] %v661_v5  ;;  %v672_v8 = vadd.f32 %v1141_v6, %v1385_v13  ;;  %v799_v15 = vmul.f32 %v770_v57, %v661_v5 }
 0x1ce   :  { %v663_v10 = vpop.f32.mrf.mxu1 }
 0x1cf   :  { %690 = vst [vmem:[%s1460_s6 + $0x78] sm:$0xff] %v672_v8  ;;  %v802_v12 = vmul.f32 %v785_v9, %v672_v8  ;;  %v664_v14 = vadd.f32 %v1385_v13, %v663_v10 }
 0x1d1   :  { %v1030_v16 = vpack.c.bf16 %v802_v12, %v801_v11  ;;  %688 = vst [vmem:[%s1460_s6 + $0x68] sm:$0xff] %v664_v14  ;;  %v800_v17 = vmul.f32 %v775_v61, %v664_v14 }
 0x1d3   :  { %1045 = vst [vmem:[#allocation3 + $0x38] sm:$0xff] %v1030_v16   ;;  %v1025_v18 = vpack.c.bf16 %v800_v17, %v799_v15 }
 0x1d5   :  { %1044 = vst [vmem:[#allocation3 + $0x30] sm:$0xff] %v1025_v18  }
 0x1d6   :  { %1183 = shalt.err (!%p1180_p4)
}
 0x1d7   :  { %s1196_s26 = smov 64   ;;  %s1197_s27 = smov 4  }
 0x1d8   :  { %896 = dma.vmem_to_hbm [thread:$0]  %s891_s24, 1024, %s1461_s7, [#allocation4], %s1196_s26, %s1196_s26, %s1197_s27  }
 0x1d9   :  { %1192 = dma.done.wait [#allocation4], 1024  }
 0x1da   :  { %1193 = vsyncadd [#allocation4], 4294966272 }
 0x1db   :  { %902 = vsyncpa [#allocation4], 1 }

</bundles_post_ra>
